<compile_context>
chip_gen: v5e
topology: v5e:2x2
jax: 0.10.0
libtpu: 0.0.40
codegen_flags: <defaults>
</compile_context>

<pallas_src>
import functools

import jax
import jax.numpy as jnp
from jax import lax
from jax.experimental import pallas as pl
from jax.experimental.pallas import tpu as pltpu


def _dsconv_relu_kernel(x_ref, dw_w_ref, dw_b_ref, pw_w_ref, pw_b_ref,
                        o_ref, pad_ref, *,
                        Cin, Cout, KH, KW, H, W, TH, Wo,
                        sh, sw, dil_h, dil_w, ph, pw_pad):
    """One grid step = (batch element n, output-row strip s).

    x_ref    : (1, Cin, H, W)         unpadded input image (VMEM, auto-pipelined)
    dw_w_ref : (KH*KW*Cin,)  f32 SMEM depthwise weights, index (kh*KW + kw)*Cin + c
    dw_b_ref : (Cin,)        f32 SMEM depthwise bias
    pw_w_ref : (Cout*Cin,)   f32 SMEM pointwise weights, index co*Cin + c
    pw_b_ref : (Cout,)       f32 SMEM pointwise bias
    o_ref    : (1, Cout, TH*Wo)       lane-dense flattened output strip
    pad_ref  : (Cin, Hp, Wp) f32      zero-padded image scratch (persists across strips)
    """
    s = pl.program_id(1)

    # Build the zero-padded image in VMEM once per batch element; borders stay zero.
    @pl.when(s == 0)
    def _():
        pad_ref[...] = jnp.zeros_like(pad_ref)
        pad_ref[:, ph:ph + H, pw_pad:pw_pad + W] = x_ref[0].astype(jnp.float32)

    row0 = pl.multiple_of(s * (TH * sh), TH * sh)      # first padded row of this strip
    span_h = (TH - 1) * sh + 1
    span_w = (Wo - 1) * sw + 1

    # ---- depthwise conv: per-channel scalar-broadcast MACs over the KHxKW taps (VPU) ----
    acc = []
    for c in range(Cin):
        a = jnp.zeros((TH, Wo), jnp.float32)
        for kh in range(KH):
            for kw in range(KW):
                patch = pad_ref[c,
                                pl.ds(row0 + kh * dil_h, span_h),
                                pl.ds(kw * dil_w, span_w)]
                if sh > 1 or sw > 1:
                    patch = patch[::sh, ::sw]
                a = a + patch * dw_w_ref[(kh * KW + kw) * Cin + c]
        acc.append(a + dw_b_ref[c])

    # ---- pointwise 1x1 conv + bias + ReLU (VPU broadcast MACs) ----
    # TODO(synk): add an MXU (dot_general) path for Cin/Cout >= 128; this scalar-MAC path
    # targets small channel counts (4 -> 8 here) where the MXU would be <2% utilised.
    outs = []
    for co in range(Cout):
        y = jnp.zeros((TH, Wo), jnp.float32)
        for c in range(Cin):
            y = y + acc[c] * pw_w_ref[co * Cin + c]
        y = y + pw_b_ref[co]
        outs.append(jnp.maximum(y, 0.0))

    y_all = jnp.stack(outs, axis=0)                    # (Cout, TH, Wo)
    o_ref[0] = y_all.reshape(Cout, TH * Wo).astype(o_ref.dtype)


def _pick_strip_rows(Ho, Wo):
    """Output rows per grid step: largest divisor of Ho whose flattened strip is
    lane-dense (multiple of 128 lanes) and at most ~2048 lanes; falls back to Ho."""
    divisors = [t for t in range(1, Ho + 1) if Ho % t == 0]
    lane_dense = [t for t in divisors if (t * Wo) % 128 == 0]
    small = [t for t in lane_dense if t * Wo <= 2048]
    if small:
        return max(small)
    if lane_dense:
        return min(lane_dense)
    return Ho


def dsconv2d_relu(x_nchw, dw_weight, dw_bias, pw_weight, pw_bias,
                  *, stride=(1, 1), padding=(1, 1), dilation=(1, 1)):
    """Depthwise-separable conv2d + ReLU (zeros padding).

    x_nchw:    (N, Cin, H, W)      -- PyTorch layout, kept native (no transposes)
    dw_weight: (Cin, 1, KH, KW)    -- torch depthwise conv weight
    dw_bias:   (Cin,)
    pw_weight: (Cout, Cin, 1, 1)   -- torch 1x1 conv weight
    pw_bias:   (Cout,)
    Returns (N, Cout, Ho, Wo) in NCHW.
    """
    N, Cin, H, W = x_nchw.shape
    Cout = pw_weight.shape[0]
    KH, KW = int(dw_weight.shape[2]), int(dw_weight.shape[3])
    sh, sw = stride
    ph, pw_pad = padding
    dil_h, dil_w = dilation
    Ho = (H + 2 * ph - dil_h * (KH - 1) - 1) // sh + 1
    Wo = (W + 2 * pw_pad - dil_w * (KW - 1) - 1) // sw + 1
    Hp, Wp = H + 2 * ph, W + 2 * pw_pad

    TH = _pick_strip_rows(Ho, Wo)
    S = Ho // TH

    # Tiny weight re-layout (glue only): flat f32 vectors for SMEM scalar access.
    dw_w_flat = jnp.transpose(dw_weight[:, 0, :, :], (1, 2, 0)).reshape(-1).astype(jnp.float32)
    dw_b_flat = dw_bias.reshape(-1).astype(jnp.float32)
    pw_w_flat = pw_weight[:, :, 0, 0].reshape(-1).astype(jnp.float32)
    pw_b_flat = pw_bias.reshape(-1).astype(jnp.float32)

    kernel = functools.partial(
        _dsconv_relu_kernel,
        Cin=Cin, Cout=Cout, KH=KH, KW=KW, H=H, W=W, TH=TH, Wo=Wo,
        sh=sh, sw=sw, dil_h=dil_h, dil_w=dil_w, ph=ph, pw_pad=pw_pad)

    # Explicit VMEM budget: 2x (double-buffered input + output blocks) + padded scratch.
    itemsize = jnp.dtype(x_nchw.dtype).itemsize
    need = 2 * (Cin * H * W + Cout * TH * Wo) * itemsize + Cin * Hp * Wp * 4 + (2 << 20)
    vmem_limit = int(min(max(need, 32 << 20), 64 << 20))

    smem_spec = pl.BlockSpec(memory_space=pltpu.MemorySpace.SMEM)

    out_flat = pl.pallas_call(
        kernel,
        out_shape=jax.ShapeDtypeStruct((N, Cout, Ho * Wo), x_nchw.dtype),
        grid=(N, S),
        in_specs=[
            pl.BlockSpec((1, Cin, H, W), lambda n, s: (n, 0, 0, 0)),
            smem_spec,   # depthwise weights
            smem_spec,   # depthwise bias
            smem_spec,   # pointwise weights
            smem_spec,   # pointwise bias
        ],
        out_specs=pl.BlockSpec((1, Cout, TH * Wo), lambda n, s: (n, 0, s)),
        scratch_shapes=[pltpu.VMEM((Cin, Hp, Wp), jnp.float32)],
        compiler_params=pltpu.CompilerParams(
            dimension_semantics=("parallel", "arbitrary"),
            vmem_limit_bytes=vmem_limit),
    )(x_nchw, dw_w_flat, dw_b_flat, pw_w_flat, pw_b_flat)

    # Free contiguous split of the flattened spatial axis back to (Ho, Wo).
    return out_flat.reshape(N, Cout, Ho, Wo)


def _reference(x_nchw, dw_weight, dw_bias, pw_weight, pw_bias,
               *, stride=(1, 1), padding=(1, 1), dilation=(1, 1)):
    """Pure-JAX reference matching torch semantics (NCHW)."""
    Cin = x_nchw.shape[1]
    y = lax.conv_general_dilated(
        x_nchw.astype(jnp.float32), dw_weight.astype(jnp.float32),
        window_strides=stride,
        padding=[(padding[0], padding[0]), (padding[1], padding[1])],
        rhs_dilation=dilation, dimension_numbers=('NCHW', 'OIHW', 'NCHW'),
        feature_group_count=Cin)
    y = y + dw_bias.reshape(1, -1, 1, 1)
    y = lax.conv_general_dilated(
        y, pw_weight.astype(jnp.float32),
        window_strides=(1, 1), padding=[(0, 0), (0, 0)],
        dimension_numbers=('NCHW', 'OIHW', 'NCHW'))
    y = y + pw_bias.reshape(1, -1, 1, 1)
    return jnp.maximum(y, 0.0)


if __name__ == "__main__":
    # Module config: in_channels=4, out_channels=8, kernel_size=3, stride=1, padding=1, bias=True
    N, Cin, H, W = 2, 4, 16, 16
    Cout, KH, KW = 8, 3, 3
    stride, padding, dilation = (1, 1), (1, 1), (1, 1)

    key = jax.random.PRNGKey(0)
    kx, k1, k2, k3, k4 = jax.random.split(key, 5)

    x = jax.random.normal(kx, (N, Cin, H, W), dtype=jnp.float32)
    # Deterministic synthetic parameters (shapes as in nn.Conv2d __init__; no checkpoint load).
    dw_weight = jax.random.normal(k1, (Cin, 1, KH, KW), dtype=jnp.float32) * 0.2
    dw_bias = jax.random.normal(k2, (Cin,), dtype=jnp.float32) * 0.1
    pw_weight = jax.random.normal(k3, (Cout, Cin, 1, 1), dtype=jnp.float32) * 0.2
    pw_bias = jax.random.normal(k4, (Cout,), dtype=jnp.float32) * 0.1

    out = dsconv2d_relu(x, dw_weight, dw_bias, pw_weight, pw_bias,
                        stride=stride, padding=padding, dilation=dilation)
    out = jax.block_until_ready(out)

    ref = _reference(x, dw_weight, dw_bias, pw_weight, pw_bias,
                     stride=stride, padding=padding, dilation=dilation)
    assert out.shape == (N, Cout, H, W), out.shape
    assert jnp.allclose(out, ref, atol=1e-4, rtol=1e-4), "mismatch vs pure-JAX reference"

    print("KERNEL_OK")
</pallas_src>

<mosaic_0001>
module attributes {stable_mosaic.version = 11 : i64} {
  func.func @_dsconv_relu_kernel(%arg0: i32, %arg1: i32, %arg2: memref<1x4x16x16xf32, #tpu.memory_space<vmem>>, %arg3: memref<36xf32, #tpu.memory_space<smem>>, %arg4: memref<4xf32, #tpu.memory_space<smem>>, %arg5: memref<32xf32, #tpu.memory_space<smem>>, %arg6: memref<8xf32, #tpu.memory_space<smem>>, %arg7: memref<1x8x256xf32, #tpu.memory_space<vmem>>, %arg8: memref<4x18x18xf32, #tpu.memory_space<vmem>>) attributes {dimension_semantics = [#tpu.dimension_semantics<parallel>, #tpu.dimension_semantics<arbitrary>], iteration_bounds = array<i64: 2, 1>, scalar_prefetch = 0 : i64, scratch_operands = 1 : i64, tpu.core_type = #tpu.core_type<tc>, window_params = [{transform_indices = @transform_0, window_bounds = array<i64: 1, 4, 16, 16>}, {transform_indices = @transform_1, window_bounds = array<i64: 36>}, {transform_indices = @transform_2, window_bounds = array<i64: 4>}, {transform_indices = @transform_3, window_bounds = array<i64: 32>}, {transform_indices = @transform_4, window_bounds = array<i64: 8>}, {transform_indices = @transform_5, window_bounds = array<i64: 1, 8, 256>}]} {
    %c0_i32 = arith.constant 0 : i32
    %0 = arith.cmpi eq, %arg1, %c0_i32 : i32
    %1 = arith.extui %0 : i1 to i32
    %c0_i32_0 = arith.constant 0 : i32
    %2 = arith.cmpi ne, %1, %c0_i32_0 : i32
    scf.if %2 {
      %cst_173 = arith.constant 0.000000e+00 : f32
      %498 = vector.broadcast %cst_173 : f32 to vector<4x18x18xf32>
      %c0_174 = arith.constant 0 : index
      %c0_175 = arith.constant 0 : index
      %c0_176 = arith.constant 0 : index
      %499 = vector.load %arg8[%c0_174, %c0_175, %c0_176] : memref<4x18x18xf32, #tpu.memory_space<vmem>>, vector<4x18x18xf32>
      tpu.vector_store %arg8[%c0_174, %c0_175, %c0_176], %498 {strides = array<i32>} : memref<4x18x18xf32, #tpu.memory_space<vmem>>, vector<4x18x18xf32>,
      %c0_177 = arith.constant 0 : index
      %c0_178 = arith.constant 0 : index
      %c0_179 = arith.constant 0 : index
      %c0_180 = arith.constant 0 : index
      %500 = vector.load %arg2[%c0_177, %c0_178, %c0_179, %c0_180] : memref<1x4x16x16xf32, #tpu.memory_space<vmem>>, vector<1x4x16x16xf32>
      %501 = vector.shape_cast %500 : vector<1x4x16x16xf32> to vector<4x16x16xf32>
      %c0_181 = arith.constant 0 : index
      %c1_182 = arith.constant 1 : index
      %c1_183 = arith.constant 1 : index
      %502 = vector.load %arg8[%c0_181, %c1_182, %c1_183] : memref<4x18x18xf32, #tpu.memory_space<vmem>>, vector<4x16x16xf32>
      tpu.vector_store %arg8[%c0_181, %c1_182, %c1_183], %501 {strides = array<i32>} : memref<4x18x18xf32, #tpu.memory_space<vmem>>, vector<4x16x16xf32>,
    } else {
    }
    %c16_i32 = arith.constant 16 : i32
    %3 = arith.muli %arg1, %c16_i32 : i32
    %4 = tpu.assume_multiple %3, 16 : i32
    %cst = arith.constant 0.000000e+00 : f32
    %5 = vector.broadcast %cst : f32 to vector<16x16xf32>
    %c0_i32_1 = arith.constant 0 : i32
    %6 = arith.addi %4, %c0_i32_1 : i32
    %c0 = arith.constant 0 : index
    %7 = arith.index_cast %6 : i32 to index
    %c0_2 = arith.constant 0 : index
    %8 = vector.load %arg8[%c0, %7, %c0_2] : memref<4x18x18xf32, #tpu.memory_space<vmem>>, vector<1x16x16xf32>
    %9 = vector.shape_cast %8 : vector<1x16x16xf32> to vector<16x16xf32>
    %c0_3 = arith.constant 0 : index
    %10 = memref.load %arg3[%c0_3] : memref<36xf32, #tpu.memory_space<smem>>
    %11 = vector.broadcast %10 : f32 to vector<16x16xf32>
    %12 = arith.mulf %9, %11 : vector<16x16xf32>
    %13 = arith.addf %5, %12 : vector<16x16xf32>
    %c0_i32_4 = arith.constant 0 : i32
    %14 = arith.addi %4, %c0_i32_4 : i32
    %c0_5 = arith.constant 0 : index
    %15 = arith.index_cast %14 : i32 to index
    %c1 = arith.constant 1 : index
    %16 = vector.load %arg8[%c0_5, %15, %c1] : memref<4x18x18xf32, #tpu.memory_space<vmem>>, vector<1x16x16xf32>
    %17 = vector.shape_cast %16 : vector<1x16x16xf32> to vector<16x16xf32>
    %c4 = arith.constant 4 : index
    %18 = memref.load %arg3[%c4] : memref<36xf32, #tpu.memory_space<smem>>
    %19 = vector.broadcast %18 : f32 to vector<16x16xf32>
    %20 = arith.mulf %17, %19 : vector<16x16xf32>
    %21 = arith.addf %13, %20 : vector<16x16xf32>
    %c0_i32_6 = arith.constant 0 : i32
    %22 = arith.addi %4, %c0_i32_6 : i32
    %c0_7 = arith.constant 0 : index
    %23 = arith.index_cast %22 : i32 to index
    %c2 = arith.constant 2 : index
    %24 = vector.load %arg8[%c0_7, %23, %c2] : memref<4x18x18xf32, #tpu.memory_space<vmem>>, vector<1x16x16xf32>
    %25 = vector.shape_cast %24 : vector<1x16x16xf32> to vector<16x16xf32>
    %c8 = arith.constant 8 : index
    %26 = memref.load %arg3[%c8] : memref<36xf32, #tpu.memory_space<smem>>
    %27 = vector.broadcast %26 : f32 to vector<16x16xf32>
    %28 = arith.mulf %25, %27 : vector<16x16xf32>
    %29 = arith.addf %21, %28 : vector<16x16xf32>
    %c1_i32 = arith.constant 1 : i32
    %30 = arith.addi %4, %c1_i32 : i32
    %c0_8 = arith.constant 0 : index
    %31 = arith.index_cast %30 : i32 to index
    %c0_9 = arith.constant 0 : index
    %32 = vector.load %arg8[%c0_8, %31, %c0_9] : memref<4x18x18xf32, #tpu.memory_space<vmem>>, vector<1x16x16xf32>
    %33 = vector.shape_cast %32 : vector<1x16x16xf32> to vector<16x16xf32>
    %c12 = arith.constant 12 : index
    %34 = memref.load %arg3[%c12] : memref<36xf32, #tpu.memory_space<smem>>
    %35 = vector.broadcast %34 : f32 to vector<16x16xf32>
    %36 = arith.mulf %33, %35 : vector<16x16xf32>
    %37 = arith.addf %29, %36 : vector<16x16xf32>
    %c1_i32_10 = arith.constant 1 : i32
    %38 = arith.addi %4, %c1_i32_10 : i32
    %c0_11 = arith.constant 0 : index
    %39 = arith.index_cast %38 : i32 to index
    %c1_12 = arith.constant 1 : index
    %40 = vector.load %arg8[%c0_11, %39, %c1_12] : memref<4x18x18xf32, #tpu.memory_space<vmem>>, vector<1x16x16xf32>
    %41 = vector.shape_cast %40 : vector<1x16x16xf32> to vector<16x16xf32>
    %c16 = arith.constant 16 : index
    %42 = memref.load %arg3[%c16] : memref<36xf32, #tpu.memory_space<smem>>
    %43 = vector.broadcast %42 : f32 to vector<16x16xf32>
    %44 = arith.mulf %41, %43 : vector<16x16xf32>
    %45 = arith.addf %37, %44 : vector<16x16xf32>
    %c1_i32_13 = arith.constant 1 : i32
    %46 = arith.addi %4, %c1_i32_13 : i32
    %c0_14 = arith.constant 0 : index
    %47 = arith.index_cast %46 : i32 to index
    %c2_15 = arith.constant 2 : index
    %48 = vector.load %arg8[%c0_14, %47, %c2_15] : memref<4x18x18xf32, #tpu.memory_space<vmem>>, vector<1x16x16xf32>
    %49 = vector.shape_cast %48 : vector<1x16x16xf32> to vector<16x16xf32>
    %c20 = arith.constant 20 : index
    %50 = memref.load %arg3[%c20] : memref<36xf32, #tpu.memory_space<smem>>
    %51 = vector.broadcast %50 : f32 to vector<16x16xf32>
    %52 = arith.mulf %49, %51 : vector<16x16xf32>
    %53 = arith.addf %45, %52 : vector<16x16xf32>
    %c2_i32 = arith.constant 2 : i32
    %54 = arith.addi %4, %c2_i32 : i32
    %c0_16 = arith.constant 0 : index
    %55 = arith.index_cast %54 : i32 to index
    %c0_17 = arith.constant 0 : index
    %56 = vector.load %arg8[%c0_16, %55, %c0_17] : memref<4x18x18xf32, #tpu.memory_space<vmem>>, vector<1x16x16xf32>
    %57 = vector.shape_cast %56 : vector<1x16x16xf32> to vector<16x16xf32>
    %c24 = arith.constant 24 : index
    %58 = memref.load %arg3[%c24] : memref<36xf32, #tpu.memory_space<smem>>
    %59 = vector.broadcast %58 : f32 to vector<16x16xf32>
    %60 = arith.mulf %57, %59 : vector<16x16xf32>
    %61 = arith.addf %53, %60 : vector<16x16xf32>
    %c2_i32_18 = arith.constant 2 : i32
    %62 = arith.addi %4, %c2_i32_18 : i32
    %c0_19 = arith.constant 0 : index
    %63 = arith.index_cast %62 : i32 to index
    %c1_20 = arith.constant 1 : index
    %64 = vector.load %arg8[%c0_19, %63, %c1_20] : memref<4x18x18xf32, #tpu.memory_space<vmem>>, vector<1x16x16xf32>
    %65 = vector.shape_cast %64 : vector<1x16x16xf32> to vector<16x16xf32>
    %c28 = arith.constant 28 : index
    %66 = memref.load %arg3[%c28] : memref<36xf32, #tpu.memory_space<smem>>
    %67 = vector.broadcast %66 : f32 to vector<16x16xf32>
    %68 = arith.mulf %65, %67 : vector<16x16xf32>
    %69 = arith.addf %61, %68 : vector<16x16xf32>
    %c2_i32_21 = arith.constant 2 : i32
    %70 = arith.addi %4, %c2_i32_21 : i32
    %c0_22 = arith.constant 0 : index
    %71 = arith.index_cast %70 : i32 to index
    %c2_23 = arith.constant 2 : index
    %72 = vector.load %arg8[%c0_22, %71, %c2_23] : memref<4x18x18xf32, #tpu.memory_space<vmem>>, vector<1x16x16xf32>
    %73 = vector.shape_cast %72 : vector<1x16x16xf32> to vector<16x16xf32>
    %c32 = arith.constant 32 : index
    %74 = memref.load %arg3[%c32] : memref<36xf32, #tpu.memory_space<smem>>
    %75 = vector.broadcast %74 : f32 to vector<16x16xf32>
    %76 = arith.mulf %73, %75 : vector<16x16xf32>
    %77 = arith.addf %69, %76 : vector<16x16xf32>
    %c0_24 = arith.constant 0 : index
    %78 = memref.load %arg4[%c0_24] : memref<4xf32, #tpu.memory_space<smem>>
    %79 = vector.broadcast %78 : f32 to vector<16x16xf32>
    %80 = arith.addf %77, %79 : vector<16x16xf32>
    %cst_25 = arith.constant 0.000000e+00 : f32
    %81 = vector.broadcast %cst_25 : f32 to vector<16x16xf32>
    %c0_i32_26 = arith.constant 0 : i32
    %82 = arith.addi %4, %c0_i32_26 : i32
    %c1_27 = arith.constant 1 : index
    %83 = arith.index_cast %82 : i32 to index
    %c0_28 = arith.constant 0 : index
    %84 = vector.load %arg8[%c1_27, %83, %c0_28] : memref<4x18x18xf32, #tpu.memory_space<vmem>>, vector<1x16x16xf32>
    %85 = vector.shape_cast %84 : vector<1x16x16xf32> to vector<16x16xf32>
    %c1_29 = arith.constant 1 : index
    %86 = memref.load %arg3[%c1_29] : memref<36xf32, #tpu.memory_space<smem>>
    %87 = vector.broadcast %86 : f32 to vector<16x16xf32>
    %88 = arith.mulf %85, %87 : vector<16x16xf32>
    %89 = arith.addf %81, %88 : vector<16x16xf32>
    %c0_i32_30 = arith.constant 0 : i32
    %90 = arith.addi %4, %c0_i32_30 : i32
    %c1_31 = arith.constant 1 : index
    %91 = arith.index_cast %90 : i32 to index
    %c1_32 = arith.constant 1 : index
    %92 = vector.load %arg8[%c1_31, %91, %c1_32] : memref<4x18x18xf32, #tpu.memory_space<vmem>>, vector<1x16x16xf32>
    %93 = vector.shape_cast %92 : vector<1x16x16xf32> to vector<16x16xf32>
    %c5 = arith.constant 5 : index
    %94 = memref.load %arg3[%c5] : memref<36xf32, #tpu.memory_space<smem>>
    %95 = vector.broadcast %94 : f32 to vector<16x16xf32>
    %96 = arith.mulf %93, %95 : vector<16x16xf32>
    %97 = arith.addf %89, %96 : vector<16x16xf32>
    %c0_i32_33 = arith.constant 0 : i32
    %98 = arith.addi %4, %c0_i32_33 : i32
    %c1_34 = arith.constant 1 : index
    %99 = arith.index_cast %98 : i32 to index
    %c2_35 = arith.constant 2 : index
    %100 = vector.load %arg8[%c1_34, %99, %c2_35] : memref<4x18x18xf32, #tpu.memory_space<vmem>>, vector<1x16x16xf32>
    %101 = vector.shape_cast %100 : vector<1x16x16xf32> to vector<16x16xf32>
    %c9 = arith.constant 9 : index
    %102 = memref.load %arg3[%c9] : memref<36xf32, #tpu.memory_space<smem>>
    %103 = vector.broadcast %102 : f32 to vector<16x16xf32>
    %104 = arith.mulf %101, %103 : vector<16x16xf32>
    %105 = arith.addf %97, %104 : vector<16x16xf32>
    %c1_i32_36 = arith.constant 1 : i32
    %106 = arith.addi %4, %c1_i32_36 : i32
    %c1_37 = arith.constant 1 : index
    %107 = arith.index_cast %106 : i32 to index
    %c0_38 = arith.constant 0 : index
    %108 = vector.load %arg8[%c1_37, %107, %c0_38] : memref<4x18x18xf32, #tpu.memory_space<vmem>>, vector<1x16x16xf32>
    %109 = vector.shape_cast %108 : vector<1x16x16xf32> to vector<16x16xf32>
    %c13 = arith.constant 13 : index
    %110 = memref.load %arg3[%c13] : memref<36xf32, #tpu.memory_space<smem>>
    %111 = vector.broadcast %110 : f32 to vector<16x16xf32>
    %112 = arith.mulf %109, %111 : vector<16x16xf32>
    %113 = arith.addf %105, %112 : vector<16x16xf32>
    %c1_i32_39 = arith.constant 1 : i32
    %114 = arith.addi %4, %c1_i32_39 : i32
    %c1_40 = arith.constant 1 : index
    %115 = arith.index_cast %114 : i32 to index
    %c1_41 = arith.constant 1 : index
    %116 = vector.load %arg8[%c1_40, %115, %c1_41] : memref<4x18x18xf32, #tpu.memory_space<vmem>>, vector<1x16x16xf32>
    %117 = vector.shape_cast %116 : vector<1x16x16xf32> to vector<16x16xf32>
    %c17 = arith.constant 17 : index
    %118 = memref.load %arg3[%c17] : memref<36xf32, #tpu.memory_space<smem>>
    %119 = vector.broadcast %118 : f32 to vector<16x16xf32>
    %120 = arith.mulf %117, %119 : vector<16x16xf32>
    %121 = arith.addf %113, %120 : vector<16x16xf32>
    %c1_i32_42 = arith.constant 1 : i32
    %122 = arith.addi %4, %c1_i32_42 : i32
    %c1_43 = arith.constant 1 : index
    %123 = arith.index_cast %122 : i32 to index
    %c2_44 = arith.constant 2 : index
    %124 = vector.load %arg8[%c1_43, %123, %c2_44] : memref<4x18x18xf32, #tpu.memory_space<vmem>>, vector<1x16x16xf32>
    %125 = vector.shape_cast %124 : vector<1x16x16xf32> to vector<16x16xf32>
    %c21 = arith.constant 21 : index
    %126 = memref.load %arg3[%c21] : memref<36xf32, #tpu.memory_space<smem>>
    %127 = vector.broadcast %126 : f32 to vector<16x16xf32>
    %128 = arith.mulf %125, %127 : vector<16x16xf32>
    %129 = arith.addf %121, %128 : vector<16x16xf32>
    %c2_i32_45 = arith.constant 2 : i32
    %130 = arith.addi %4, %c2_i32_45 : i32
    %c1_46 = arith.constant 1 : index
    %131 = arith.index_cast %130 : i32 to index
    %c0_47 = arith.constant 0 : index
    %132 = vector.load %arg8[%c1_46, %131, %c0_47] : memref<4x18x18xf32, #tpu.memory_space<vmem>>, vector<1x16x16xf32>
    %133 = vector.shape_cast %132 : vector<1x16x16xf32> to vector<16x16xf32>
    %c25 = arith.constant 25 : index
    %134 = memref.load %arg3[%c25] : memref<36xf32, #tpu.memory_space<smem>>
    %135 = vector.broadcast %134 : f32 to vector<16x16xf32>
    %136 = arith.mulf %133, %135 : vector<16x16xf32>
    %137 = arith.addf %129, %136 : vector<16x16xf32>
    %c2_i32_48 = arith.constant 2 : i32
    %138 = arith.addi %4, %c2_i32_48 : i32
    %c1_49 = arith.constant 1 : index
    %139 = arith.index_cast %138 : i32 to index
    %c1_50 = arith.constant 1 : index
    %140 = vector.load %arg8[%c1_49, %139, %c1_50] : memref<4x18x18xf32, #tpu.memory_space<vmem>>, vector<1x16x16xf32>
    %141 = vector.shape_cast %140 : vector<1x16x16xf32> to vector<16x16xf32>
    %c29 = arith.constant 29 : index
    %142 = memref.load %arg3[%c29] : memref<36xf32, #tpu.memory_space<smem>>
    %143 = vector.broadcast %142 : f32 to vector<16x16xf32>
    %144 = arith.mulf %141, %143 : vector<16x16xf32>
    %145 = arith.addf %137, %144 : vector<16x16xf32>
    %c2_i32_51 = arith.constant 2 : i32
    %146 = arith.addi %4, %c2_i32_51 : i32
    %c1_52 = arith.constant 1 : index
    %147 = arith.index_cast %146 : i32 to index
    %c2_53 = arith.constant 2 : index
    %148 = vector.load %arg8[%c1_52, %147, %c2_53] : memref<4x18x18xf32, #tpu.memory_space<vmem>>, vector<1x16x16xf32>
    %149 = vector.shape_cast %148 : vector<1x16x16xf32> to vector<16x16xf32>
    %c33 = arith.constant 33 : index
    %150 = memref.load %arg3[%c33] : memref<36xf32, #tpu.memory_space<smem>>
    %151 = vector.broadcast %150 : f32 to vector<16x16xf32>
    %152 = arith.mulf %149, %151 : vector<16x16xf32>
    %153 = arith.addf %145, %152 : vector<16x16xf32>
    %c1_54 = arith.constant 1 : index
    %154 = memref.load %arg4[%c1_54] : memref<4xf32, #tpu.memory_space<smem>>
    %155 = vector.broadcast %154 : f32 to vector<16x16xf32>
    %156 = arith.addf %153, %155 : vector<16x16xf32>
    %cst_55 = arith.constant 0.000000e+00 : f32
    %157 = vector.broadcast %cst_55 : f32 to vector<16x16xf32>
    %c0_i32_56 = arith.constant 0 : i32
    %158 = arith.addi %4, %c0_i32_56 : i32
    %c2_57 = arith.constant 2 : index
    %159 = arith.index_cast %158 : i32 to index
    %c0_58 = arith.constant 0 : index
    %160 = vector.load %arg8[%c2_57, %159, %c0_58] : memref<4x18x18xf32, #tpu.memory_space<vmem>>, vector<1x16x16xf32>
    %161 = vector.shape_cast %160 : vector<1x16x16xf32> to vector<16x16xf32>
    %c2_59 = arith.constant 2 : index
    %162 = memref.load %arg3[%c2_59] : memref<36xf32, #tpu.memory_space<smem>>
    %163 = vector.broadcast %162 : f32 to vector<16x16xf32>
    %164 = arith.mulf %161, %163 : vector<16x16xf32>
    %165 = arith.addf %157, %164 : vector<16x16xf32>
    %c0_i32_60 = arith.constant 0 : i32
    %166 = arith.addi %4, %c0_i32_60 : i32
    %c2_61 = arith.constant 2 : index
    %167 = arith.index_cast %166 : i32 to index
    %c1_62 = arith.constant 1 : index
    %168 = vector.load %arg8[%c2_61, %167, %c1_62] : memref<4x18x18xf32, #tpu.memory_space<vmem>>, vector<1x16x16xf32>
    %169 = vector.shape_cast %168 : vector<1x16x16xf32> to vector<16x16xf32>
    %c6 = arith.constant 6 : index
    %170 = memref.load %arg3[%c6] : memref<36xf32, #tpu.memory_space<smem>>
    %171 = vector.broadcast %170 : f32 to vector<16x16xf32>
    %172 = arith.mulf %169, %171 : vector<16x16xf32>
    %173 = arith.addf %165, %172 : vector<16x16xf32>
    %c0_i32_63 = arith.constant 0 : i32
    %174 = arith.addi %4, %c0_i32_63 : i32
    %c2_64 = arith.constant 2 : index
    %175 = arith.index_cast %174 : i32 to index
    %c2_65 = arith.constant 2 : index
    %176 = vector.load %arg8[%c2_64, %175, %c2_65] : memref<4x18x18xf32, #tpu.memory_space<vmem>>, vector<1x16x16xf32>
    %177 = vector.shape_cast %176 : vector<1x16x16xf32> to vector<16x16xf32>
    %c10 = arith.constant 10 : index
    %178 = memref.load %arg3[%c10] : memref<36xf32, #tpu.memory_space<smem>>
    %179 = vector.broadcast %178 : f32 to vector<16x16xf32>
    %180 = arith.mulf %177, %179 : vector<16x16xf32>
    %181 = arith.addf %173, %180 : vector<16x16xf32>
    %c1_i32_66 = arith.constant 1 : i32
    %182 = arith.addi %4, %c1_i32_66 : i32
    %c2_67 = arith.constant 2 : index
    %183 = arith.index_cast %182 : i32 to index
    %c0_68 = arith.constant 0 : index
    %184 = vector.load %arg8[%c2_67, %183, %c0_68] : memref<4x18x18xf32, #tpu.memory_space<vmem>>, vector<1x16x16xf32>
    %185 = vector.shape_cast %184 : vector<1x16x16xf32> to vector<16x16xf32>
    %c14 = arith.constant 14 : index
    %186 = memref.load %arg3[%c14] : memref<36xf32, #tpu.memory_space<smem>>
    %187 = vector.broadcast %186 : f32 to vector<16x16xf32>
    %188 = arith.mulf %185, %187 : vector<16x16xf32>
    %189 = arith.addf %181, %188 : vector<16x16xf32>
    %c1_i32_69 = arith.constant 1 : i32
    %190 = arith.addi %4, %c1_i32_69 : i32
    %c2_70 = arith.constant 2 : index
    %191 = arith.index_cast %190 : i32 to index
    %c1_71 = arith.constant 1 : index
    %192 = vector.load %arg8[%c2_70, %191, %c1_71] : memref<4x18x18xf32, #tpu.memory_space<vmem>>, vector<1x16x16xf32>
    %193 = vector.shape_cast %192 : vector<1x16x16xf32> to vector<16x16xf32>
    %c18 = arith.constant 18 : index
    %194 = memref.load %arg3[%c18] : memref<36xf32, #tpu.memory_space<smem>>
    %195 = vector.broadcast %194 : f32 to vector<16x16xf32>
    %196 = arith.mulf %193, %195 : vector<16x16xf32>
    %197 = arith.addf %189, %196 : vector<16x16xf32>
    %c1_i32_72 = arith.constant 1 : i32
    %198 = arith.addi %4, %c1_i32_72 : i32
    %c2_73 = arith.constant 2 : index
    %199 = arith.index_cast %198 : i32 to index
    %c2_74 = arith.constant 2 : index
    %200 = vector.load %arg8[%c2_73, %199, %c2_74] : memref<4x18x18xf32, #tpu.memory_space<vmem>>, vector<1x16x16xf32>
    %201 = vector.shape_cast %200 : vector<1x16x16xf32> to vector<16x16xf32>
    %c22 = arith.constant 22 : index
    %202 = memref.load %arg3[%c22] : memref<36xf32, #tpu.memory_space<smem>>
    %203 = vector.broadcast %202 : f32 to vector<16x16xf32>
    %204 = arith.mulf %201, %203 : vector<16x16xf32>
    %205 = arith.addf %197, %204 : vector<16x16xf32>
    %c2_i32_75 = arith.constant 2 : i32
    %206 = arith.addi %4, %c2_i32_75 : i32
    %c2_76 = arith.constant 2 : index
    %207 = arith.index_cast %206 : i32 to index
    %c0_77 = arith.constant 0 : index
    %208 = vector.load %arg8[%c2_76, %207, %c0_77] : memref<4x18x18xf32, #tpu.memory_space<vmem>>, vector<1x16x16xf32>
    %209 = vector.shape_cast %208 : vector<1x16x16xf32> to vector<16x16xf32>
    %c26 = arith.constant 26 : index
    %210 = memref.load %arg3[%c26] : memref<36xf32, #tpu.memory_space<smem>>
    %211 = vector.broadcast %210 : f32 to vector<16x16xf32>
    %212 = arith.mulf %209, %211 : vector<16x16xf32>
    %213 = arith.addf %205, %212 : vector<16x16xf32>
    %c2_i32_78 = arith.constant 2 : i32
    %214 = arith.addi %4, %c2_i32_78 : i32
    %c2_79 = arith.constant 2 : index
    %215 = arith.index_cast %214 : i32 to index
    %c1_80 = arith.constant 1 : index
    %216 = vector.load %arg8[%c2_79, %215, %c1_80] : memref<4x18x18xf32, #tpu.memory_space<vmem>>, vector<1x16x16xf32>
    %217 = vector.shape_cast %216 : vector<1x16x16xf32> to vector<16x16xf32>
    %c30 = arith.constant 30 : index
    %218 = memref.load %arg3[%c30] : memref<36xf32, #tpu.memory_space<smem>>
    %219 = vector.broadcast %218 : f32 to vector<16x16xf32>
    %220 = arith.mulf %217, %219 : vector<16x16xf32>
    %221 = arith.addf %213, %220 : vector<16x16xf32>
    %c2_i32_81 = arith.constant 2 : i32
    %222 = arith.addi %4, %c2_i32_81 : i32
    %c2_82 = arith.constant 2 : index
    %223 = arith.index_cast %222 : i32 to index
    %c2_83 = arith.constant 2 : index
    %224 = vector.load %arg8[%c2_82, %223, %c2_83] : memref<4x18x18xf32, #tpu.memory_space<vmem>>, vector<1x16x16xf32>
    %225 = vector.shape_cast %224 : vector<1x16x16xf32> to vector<16x16xf32>
    %c34 = arith.constant 34 : index
    %226 = memref.load %arg3[%c34] : memref<36xf32, #tpu.memory_space<smem>>
    %227 = vector.broadcast %226 : f32 to vector<16x16xf32>
    %228 = arith.mulf %225, %227 : vector<16x16xf32>
    %229 = arith.addf %221, %228 : vector<16x16xf32>
    %c2_84 = arith.constant 2 : index
    %230 = memref.load %arg4[%c2_84] : memref<4xf32, #tpu.memory_space<smem>>
    %231 = vector.broadcast %230 : f32 to vector<16x16xf32>
    %232 = arith.addf %229, %231 : vector<16x16xf32>
    %cst_85 = arith.constant 0.000000e+00 : f32
    %233 = vector.broadcast %cst_85 : f32 to vector<16x16xf32>
    %c0_i32_86 = arith.constant 0 : i32
    %234 = arith.addi %4, %c0_i32_86 : i32
    %c3 = arith.constant 3 : index
    %235 = arith.index_cast %234 : i32 to index
    %c0_87 = arith.constant 0 : index
    %236 = vector.load %arg8[%c3, %235, %c0_87] : memref<4x18x18xf32, #tpu.memory_space<vmem>>, vector<1x16x16xf32>
    %237 = vector.shape_cast %236 : vector<1x16x16xf32> to vector<16x16xf32>
    %c3_88 = arith.constant 3 : index
    %238 = memref.load %arg3[%c3_88] : memref<36xf32, #tpu.memory_space<smem>>
    %239 = vector.broadcast %238 : f32 to vector<16x16xf32>
    %240 = arith.mulf %237, %239 : vector<16x16xf32>
    %241 = arith.addf %233, %240 : vector<16x16xf32>
    %c0_i32_89 = arith.constant 0 : i32
    %242 = arith.addi %4, %c0_i32_89 : i32
    %c3_90 = arith.constant 3 : index
    %243 = arith.index_cast %242 : i32 to index
    %c1_91 = arith.constant 1 : index
    %244 = vector.load %arg8[%c3_90, %243, %c1_91] : memref<4x18x18xf32, #tpu.memory_space<vmem>>, vector<1x16x16xf32>
    %245 = vector.shape_cast %244 : vector<1x16x16xf32> to vector<16x16xf32>
    %c7 = arith.constant 7 : index
    %246 = memref.load %arg3[%c7] : memref<36xf32, #tpu.memory_space<smem>>
    %247 = vector.broadcast %246 : f32 to vector<16x16xf32>
    %248 = arith.mulf %245, %247 : vector<16x16xf32>
    %249 = arith.addf %241, %248 : vector<16x16xf32>
    %c0_i32_92 = arith.constant 0 : i32
    %250 = arith.addi %4, %c0_i32_92 : i32
    %c3_93 = arith.constant 3 : index
    %251 = arith.index_cast %250 : i32 to index
    %c2_94 = arith.constant 2 : index
    %252 = vector.load %arg8[%c3_93, %251, %c2_94] : memref<4x18x18xf32, #tpu.memory_space<vmem>>, vector<1x16x16xf32>
    %253 = vector.shape_cast %252 : vector<1x16x16xf32> to vector<16x16xf32>
    %c11 = arith.constant 11 : index
    %254 = memref.load %arg3[%c11] : memref<36xf32, #tpu.memory_space<smem>>
    %255 = vector.broadcast %254 : f32 to vector<16x16xf32>
    %256 = arith.mulf %253, %255 : vector<16x16xf32>
    %257 = arith.addf %249, %256 : vector<16x16xf32>
    %c1_i32_95 = arith.constant 1 : i32
    %258 = arith.addi %4, %c1_i32_95 : i32
    %c3_96 = arith.constant 3 : index
    %259 = arith.index_cast %258 : i32 to index
    %c0_97 = arith.constant 0 : index
    %260 = vector.load %arg8[%c3_96, %259, %c0_97] : memref<4x18x18xf32, #tpu.memory_space<vmem>>, vector<1x16x16xf32>
    %261 = vector.shape_cast %260 : vector<1x16x16xf32> to vector<16x16xf32>
    %c15 = arith.constant 15 : index
    %262 = memref.load %arg3[%c15] : memref<36xf32, #tpu.memory_space<smem>>
    %263 = vector.broadcast %262 : f32 to vector<16x16xf32>
    %264 = arith.mulf %261, %263 : vector<16x16xf32>
    %265 = arith.addf %257, %264 : vector<16x16xf32>
    %c1_i32_98 = arith.constant 1 : i32
    %266 = arith.addi %4, %c1_i32_98 : i32
    %c3_99 = arith.constant 3 : index
    %267 = arith.index_cast %266 : i32 to index
    %c1_100 = arith.constant 1 : index
    %268 = vector.load %arg8[%c3_99, %267, %c1_100] : memref<4x18x18xf32, #tpu.memory_space<vmem>>, vector<1x16x16xf32>
    %269 = vector.shape_cast %268 : vector<1x16x16xf32> to vector<16x16xf32>
    %c19 = arith.constant 19 : index
    %270 = memref.load %arg3[%c19] : memref<36xf32, #tpu.memory_space<smem>>
    %271 = vector.broadcast %270 : f32 to vector<16x16xf32>
    %272 = arith.mulf %269, %271 : vector<16x16xf32>
    %273 = arith.addf %265, %272 : vector<16x16xf32>
    %c1_i32_101 = arith.constant 1 : i32
    %274 = arith.addi %4, %c1_i32_101 : i32
    %c3_102 = arith.constant 3 : index
    %275 = arith.index_cast %274 : i32 to index
    %c2_103 = arith.constant 2 : index
    %276 = vector.load %arg8[%c3_102, %275, %c2_103] : memref<4x18x18xf32, #tpu.memory_space<vmem>>, vector<1x16x16xf32>
    %277 = vector.shape_cast %276 : vector<1x16x16xf32> to vector<16x16xf32>
    %c23 = arith.constant 23 : index
    %278 = memref.load %arg3[%c23] : memref<36xf32, #tpu.memory_space<smem>>
    %279 = vector.broadcast %278 : f32 to vector<16x16xf32>
    %280 = arith.mulf %277, %279 : vector<16x16xf32>
    %281 = arith.addf %273, %280 : vector<16x16xf32>
    %c2_i32_104 = arith.constant 2 : i32
    %282 = arith.addi %4, %c2_i32_104 : i32
    %c3_105 = arith.constant 3 : index
    %283 = arith.index_cast %282 : i32 to index
    %c0_106 = arith.constant 0 : index
    %284 = vector.load %arg8[%c3_105, %283, %c0_106] : memref<4x18x18xf32, #tpu.memory_space<vmem>>, vector<1x16x16xf32>
    %285 = vector.shape_cast %284 : vector<1x16x16xf32> to vector<16x16xf32>
    %c27 = arith.constant 27 : index
    %286 = memref.load %arg3[%c27] : memref<36xf32, #tpu.memory_space<smem>>
    %287 = vector.broadcast %286 : f32 to vector<16x16xf32>
    %288 = arith.mulf %285, %287 : vector<16x16xf32>
    %289 = arith.addf %281, %288 : vector<16x16xf32>
    %c2_i32_107 = arith.constant 2 : i32
    %290 = arith.addi %4, %c2_i32_107 : i32
    %c3_108 = arith.constant 3 : index
    %291 = arith.index_cast %290 : i32 to index
    %c1_109 = arith.constant 1 : index
    %292 = vector.load %arg8[%c3_108, %291, %c1_109] : memref<4x18x18xf32, #tpu.memory_space<vmem>>, vector<1x16x16xf32>
    %293 = vector.shape_cast %292 : vector<1x16x16xf32> to vector<16x16xf32>
    %c31 = arith.constant 31 : index
    %294 = memref.load %arg3[%c31] : memref<36xf32, #tpu.memory_space<smem>>
    %295 = vector.broadcast %294 : f32 to vector<16x16xf32>
    %296 = arith.mulf %293, %295 : vector<16x16xf32>
    %297 = arith.addf %289, %296 : vector<16x16xf32>
    %c2_i32_110 = arith.constant 2 : i32
    %298 = arith.addi %4, %c2_i32_110 : i32
    %c3_111 = arith.constant 3 : index
    %299 = arith.index_cast %298 : i32 to index
    %c2_112 = arith.constant 2 : index
    %300 = vector.load %arg8[%c3_111, %299, %c2_112] : memref<4x18x18xf32, #tpu.memory_space<vmem>>, vector<1x16x16xf32>
    %301 = vector.shape_cast %300 : vector<1x16x16xf32> to vector<16x16xf32>
    %c35 = arith.constant 35 : index
    %302 = memref.load %arg3[%c35] : memref<36xf32, #tpu.memory_space<smem>>
    %303 = vector.broadcast %302 : f32 to vector<16x16xf32>
    %304 = arith.mulf %301, %303 : vector<16x16xf32>
    %305 = arith.addf %297, %304 : vector<16x16xf32>
    %c3_113 = arith.constant 3 : index
    %306 = memref.load %arg4[%c3_113] : memref<4xf32, #tpu.memory_space<smem>>
    %307 = vector.broadcast %306 : f32 to vector<16x16xf32>
    %308 = arith.addf %305, %307 : vector<16x16xf32>
    %cst_114 = arith.constant 0.000000e+00 : f32
    %309 = vector.broadcast %cst_114 : f32 to vector<16x16xf32>
    %c0_115 = arith.constant 0 : index
    %310 = memref.load %arg5[%c0_115] : memref<32xf32, #tpu.memory_space<smem>>
    %311 = vector.broadcast %310 : f32 to vector<16x16xf32>
    %312 = arith.mulf %80, %311 : vector<16x16xf32>
    %313 = arith.addf %309, %312 : vector<16x16xf32>
    %c1_116 = arith.constant 1 : index
    %314 = memref.load %arg5[%c1_116] : memref<32xf32, #tpu.memory_space<smem>>
    %315 = vector.broadcast %314 : f32 to vector<16x16xf32>
    %316 = arith.mulf %156, %315 : vector<16x16xf32>
    %317 = arith.addf %313, %316 : vector<16x16xf32>
    %c2_117 = arith.constant 2 : index
    %318 = memref.load %arg5[%c2_117] : memref<32xf32, #tpu.memory_space<smem>>
    %319 = vector.broadcast %318 : f32 to vector<16x16xf32>
    %320 = arith.mulf %232, %319 : vector<16x16xf32>
    %321 = arith.addf %317, %320 : vector<16x16xf32>
    %c3_118 = arith.constant 3 : index
    %322 = memref.load %arg5[%c3_118] : memref<32xf32, #tpu.memory_space<smem>>
    %323 = vector.broadcast %322 : f32 to vector<16x16xf32>
    %324 = arith.mulf %308, %323 : vector<16x16xf32>
    %325 = arith.addf %321, %324 : vector<16x16xf32>
    %c0_119 = arith.constant 0 : index
    %326 = memref.load %arg6[%c0_119] : memref<8xf32, #tpu.memory_space<smem>>
    %327 = vector.broadcast %326 : f32 to vector<16x16xf32>
    %328 = arith.addf %325, %327 : vector<16x16xf32>
    %cst_120 = arith.constant 0.000000e+00 : f32
    %329 = vector.broadcast %cst_120 : f32 to vector<16x16xf32>
    %330 = arith.maximumf %328, %329 : vector<16x16xf32>
    %cst_121 = arith.constant 0.000000e+00 : f32
    %331 = vector.broadcast %cst_121 : f32 to vector<16x16xf32>
    %c4_122 = arith.constant 4 : index
    %332 = memref.load %arg5[%c4_122] : memref<32xf32, #tpu.memory_space<smem>>
    %333 = vector.broadcast %332 : f32 to vector<16x16xf32>
    %334 = arith.mulf %80, %333 : vector<16x16xf32>
    %335 = arith.addf %331, %334 : vector<16x16xf32>
    %c5_123 = arith.constant 5 : index
    %336 = memref.load %arg5[%c5_123] : memref<32xf32, #tpu.memory_space<smem>>
    %337 = vector.broadcast %336 : f32 to vector<16x16xf32>
    %338 = arith.mulf %156, %337 : vector<16x16xf32>
    %339 = arith.addf %335, %338 : vector<16x16xf32>
    %c6_124 = arith.constant 6 : index
    %340 = memref.load %arg5[%c6_124] : memref<32xf32, #tpu.memory_space<smem>>
    %341 = vector.broadcast %340 : f32 to vector<16x16xf32>
    %342 = arith.mulf %232, %341 : vector<16x16xf32>
    %343 = arith.addf %339, %342 : vector<16x16xf32>
    %c7_125 = arith.constant 7 : index
    %344 = memref.load %arg5[%c7_125] : memref<32xf32, #tpu.memory_space<smem>>
    %345 = vector.broadcast %344 : f32 to vector<16x16xf32>
    %346 = arith.mulf %308, %345 : vector<16x16xf32>
    %347 = arith.addf %343, %346 : vector<16x16xf32>
    %c1_126 = arith.constant 1 : index
    %348 = memref.load %arg6[%c1_126] : memref<8xf32, #tpu.memory_space<smem>>
    %349 = vector.broadcast %348 : f32 to vector<16x16xf32>
    %350 = arith.addf %347, %349 : vector<16x16xf32>
    %cst_127 = arith.constant 0.000000e+00 : f32
    %351 = vector.broadcast %cst_127 : f32 to vector<16x16xf32>
    %352 = arith.maximumf %350, %351 : vector<16x16xf32>
    %cst_128 = arith.constant 0.000000e+00 : f32
    %353 = vector.broadcast %cst_128 : f32 to vector<16x16xf32>
    %c8_129 = arith.constant 8 : index
    %354 = memref.load %arg5[%c8_129] : memref<32xf32, #tpu.memory_space<smem>>
    %355 = vector.broadcast %354 : f32 to vector<16x16xf32>
    %356 = arith.mulf %80, %355 : vector<16x16xf32>
    %357 = arith.addf %353, %356 : vector<16x16xf32>
    %c9_130 = arith.constant 9 : index
    %358 = memref.load %arg5[%c9_130] : memref<32xf32, #tpu.memory_space<smem>>
    %359 = vector.broadcast %358 : f32 to vector<16x16xf32>
    %360 = arith.mulf %156, %359 : vector<16x16xf32>
    %361 = arith.addf %357, %360 : vector<16x16xf32>
    %c10_131 = arith.constant 10 : index
    %362 = memref.load %arg5[%c10_131] : memref<32xf32, #tpu.memory_space<smem>>
    %363 = vector.broadcast %362 : f32 to vector<16x16xf32>
    %364 = arith.mulf %232, %363 : vector<16x16xf32>
    %365 = arith.addf %361, %364 : vector<16x16xf32>
    %c11_132 = arith.constant 11 : index
    %366 = memref.load %arg5[%c11_132] : memref<32xf32, #tpu.memory_space<smem>>
    %367 = vector.broadcast %366 : f32 to vector<16x16xf32>
    %368 = arith.mulf %308, %367 : vector<16x16xf32>
    %369 = arith.addf %365, %368 : vector<16x16xf32>
    %c2_133 = arith.constant 2 : index
    %370 = memref.load %arg6[%c2_133] : memref<8xf32, #tpu.memory_space<smem>>
    %371 = vector.broadcast %370 : f32 to vector<16x16xf32>
    %372 = arith.addf %369, %371 : vector<16x16xf32>
    %cst_134 = arith.constant 0.000000e+00 : f32
    %373 = vector.broadcast %cst_134 : f32 to vector<16x16xf32>
    %374 = arith.maximumf %372, %373 : vector<16x16xf32>
    %cst_135 = arith.constant 0.000000e+00 : f32
    %375 = vector.broadcast %cst_135 : f32 to vector<16x16xf32>
    %c12_136 = arith.constant 12 : index
    %376 = memref.load %arg5[%c12_136] : memref<32xf32, #tpu.memory_space<smem>>
    %377 = vector.broadcast %376 : f32 to vector<16x16xf32>
    %378 = arith.mulf %80, %377 : vector<16x16xf32>
    %379 = arith.addf %375, %378 : vector<16x16xf32>
    %c13_137 = arith.constant 13 : index
    %380 = memref.load %arg5[%c13_137] : memref<32xf32, #tpu.memory_space<smem>>
    %381 = vector.broadcast %380 : f32 to vector<16x16xf32>
    %382 = arith.mulf %156, %381 : vector<16x16xf32>
    %383 = arith.addf %379, %382 : vector<16x16xf32>
    %c14_138 = arith.constant 14 : index
    %384 = memref.load %arg5[%c14_138] : memref<32xf32, #tpu.memory_space<smem>>
    %385 = vector.broadcast %384 : f32 to vector<16x16xf32>
    %386 = arith.mulf %232, %385 : vector<16x16xf32>
    %387 = arith.addf %383, %386 : vector<16x16xf32>
    %c15_139 = arith.constant 15 : index
    %388 = memref.load %arg5[%c15_139] : memref<32xf32, #tpu.memory_space<smem>>
    %389 = vector.broadcast %388 : f32 to vector<16x16xf32>
    %390 = arith.mulf %308, %389 : vector<16x16xf32>
    %391 = arith.addf %387, %390 : vector<16x16xf32>
    %c3_140 = arith.constant 3 : index
    %392 = memref.load %arg6[%c3_140] : memref<8xf32, #tpu.memory_space<smem>>
    %393 = vector.broadcast %392 : f32 to vector<16x16xf32>
    %394 = arith.addf %391, %393 : vector<16x16xf32>
    %cst_141 = arith.constant 0.000000e+00 : f32
    %395 = vector.broadcast %cst_141 : f32 to vector<16x16xf32>
    %396 = arith.maximumf %394, %395 : vector<16x16xf32>
    %cst_142 = arith.constant 0.000000e+00 : f32
    %397 = vector.broadcast %cst_142 : f32 to vector<16x16xf32>
    %c16_143 = arith.constant 16 : index
    %398 = memref.load %arg5[%c16_143] : memref<32xf32, #tpu.memory_space<smem>>
    %399 = vector.broadcast %398 : f32 to vector<16x16xf32>
    %400 = arith.mulf %80, %399 : vector<16x16xf32>
    %401 = arith.addf %397, %400 : vector<16x16xf32>
    %c17_144 = arith.constant 17 : index
    %402 = memref.load %arg5[%c17_144] : memref<32xf32, #tpu.memory_space<smem>>
    %403 = vector.broadcast %402 : f32 to vector<16x16xf32>
    %404 = arith.mulf %156, %403 : vector<16x16xf32>
    %405 = arith.addf %401, %404 : vector<16x16xf32>
    %c18_145 = arith.constant 18 : index
    %406 = memref.load %arg5[%c18_145] : memref<32xf32, #tpu.memory_space<smem>>
    %407 = vector.broadcast %406 : f32 to vector<16x16xf32>
    %408 = arith.mulf %232, %407 : vector<16x16xf32>
    %409 = arith.addf %405, %408 : vector<16x16xf32>
    %c19_146 = arith.constant 19 : index
    %410 = memref.load %arg5[%c19_146] : memref<32xf32, #tpu.memory_space<smem>>
    %411 = vector.broadcast %410 : f32 to vector<16x16xf32>
    %412 = arith.mulf %308, %411 : vector<16x16xf32>
    %413 = arith.addf %409, %412 : vector<16x16xf32>
    %c4_147 = arith.constant 4 : index
    %414 = memref.load %arg6[%c4_147] : memref<8xf32, #tpu.memory_space<smem>>
    %415 = vector.broadcast %414 : f32 to vector<16x16xf32>
    %416 = arith.addf %413, %415 : vector<16x16xf32>
    %cst_148 = arith.constant 0.000000e+00 : f32
    %417 = vector.broadcast %cst_148 : f32 to vector<16x16xf32>
    %418 = arith.maximumf %416, %417 : vector<16x16xf32>
    %cst_149 = arith.constant 0.000000e+00 : f32
    %419 = vector.broadcast %cst_149 : f32 to vector<16x16xf32>
    %c20_150 = arith.constant 20 : index
    %420 = memref.load %arg5[%c20_150] : memref<32xf32, #tpu.memory_space<smem>>
    %421 = vector.broadcast %420 : f32 to vector<16x16xf32>
    %422 = arith.mulf %80, %421 : vector<16x16xf32>
    %423 = arith.addf %419, %422 : vector<16x16xf32>
    %c21_151 = arith.constant 21 : index
    %424 = memref.load %arg5[%c21_151] : memref<32xf32, #tpu.memory_space<smem>>
    %425 = vector.broadcast %424 : f32 to vector<16x16xf32>
    %426 = arith.mulf %156, %425 : vector<16x16xf32>
    %427 = arith.addf %423, %426 : vector<16x16xf32>
    %c22_152 = arith.constant 22 : index
    %428 = memref.load %arg5[%c22_152] : memref<32xf32, #tpu.memory_space<smem>>
    %429 = vector.broadcast %428 : f32 to vector<16x16xf32>
    %430 = arith.mulf %232, %429 : vector<16x16xf32>
    %431 = arith.addf %427, %430 : vector<16x16xf32>
    %c23_153 = arith.constant 23 : index
    %432 = memref.load %arg5[%c23_153] : memref<32xf32, #tpu.memory_space<smem>>
    %433 = vector.broadcast %432 : f32 to vector<16x16xf32>
    %434 = arith.mulf %308, %433 : vector<16x16xf32>
    %435 = arith.addf %431, %434 : vector<16x16xf32>
    %c5_154 = arith.constant 5 : index
    %436 = memref.load %arg6[%c5_154] : memref<8xf32, #tpu.memory_space<smem>>
    %437 = vector.broadcast %436 : f32 to vector<16x16xf32>
    %438 = arith.addf %435, %437 : vector<16x16xf32>
    %cst_155 = arith.constant 0.000000e+00 : f32
    %439 = vector.broadcast %cst_155 : f32 to vector<16x16xf32>
    %440 = arith.maximumf %438, %439 : vector<16x16xf32>
    %cst_156 = arith.constant 0.000000e+00 : f32
    %441 = vector.broadcast %cst_156 : f32 to vector<16x16xf32>
    %c24_157 = arith.constant 24 : index
    %442 = memref.load %arg5[%c24_157] : memref<32xf32, #tpu.memory_space<smem>>
    %443 = vector.broadcast %442 : f32 to vector<16x16xf32>
    %444 = arith.mulf %80, %443 : vector<16x16xf32>
    %445 = arith.addf %441, %444 : vector<16x16xf32>
    %c25_158 = arith.constant 25 : index
    %446 = memref.load %arg5[%c25_158] : memref<32xf32, #tpu.memory_space<smem>>
    %447 = vector.broadcast %446 : f32 to vector<16x16xf32>
    %448 = arith.mulf %156, %447 : vector<16x16xf32>
    %449 = arith.addf %445, %448 : vector<16x16xf32>
    %c26_159 = arith.constant 26 : index
    %450 = memref.load %arg5[%c26_159] : memref<32xf32, #tpu.memory_space<smem>>
    %451 = vector.broadcast %450 : f32 to vector<16x16xf32>
    %452 = arith.mulf %232, %451 : vector<16x16xf32>
    %453 = arith.addf %449, %452 : vector<16x16xf32>
    %c27_160 = arith.constant 27 : index
    %454 = memref.load %arg5[%c27_160] : memref<32xf32, #tpu.memory_space<smem>>
    %455 = vector.broadcast %454 : f32 to vector<16x16xf32>
    %456 = arith.mulf %308, %455 : vector<16x16xf32>
    %457 = arith.addf %453, %456 : vector<16x16xf32>
    %c6_161 = arith.constant 6 : index
    %458 = memref.load %arg6[%c6_161] : memref<8xf32, #tpu.memory_space<smem>>
    %459 = vector.broadcast %458 : f32 to vector<16x16xf32>
    %460 = arith.addf %457, %459 : vector<16x16xf32>
    %cst_162 = arith.constant 0.000000e+00 : f32
    %461 = vector.broadcast %cst_162 : f32 to vector<16x16xf32>
    %462 = arith.maximumf %460, %461 : vector<16x16xf32>
    %cst_163 = arith.constant 0.000000e+00 : f32
    %463 = vector.broadcast %cst_163 : f32 to vector<16x16xf32>
    %c28_164 = arith.constant 28 : index
    %464 = memref.load %arg5[%c28_164] : memref<32xf32, #tpu.memory_space<smem>>
    %465 = vector.broadcast %464 : f32 to vector<16x16xf32>
    %466 = arith.mulf %80, %465 : vector<16x16xf32>
    %467 = arith.addf %463, %466 : vector<16x16xf32>
    %c29_165 = arith.constant 29 : index
    %468 = memref.load %arg5[%c29_165] : memref<32xf32, #tpu.memory_space<smem>>
    %469 = vector.broadcast %468 : f32 to vector<16x16xf32>
    %470 = arith.mulf %156, %469 : vector<16x16xf32>
    %471 = arith.addf %467, %470 : vector<16x16xf32>
    %c30_166 = arith.constant 30 : index
    %472 = memref.load %arg5[%c30_166] : memref<32xf32, #tpu.memory_space<smem>>
    %473 = vector.broadcast %472 : f32 to vector<16x16xf32>
    %474 = arith.mulf %232, %473 : vector<16x16xf32>
    %475 = arith.addf %471, %474 : vector<16x16xf32>
    %c31_167 = arith.constant 31 : index
    %476 = memref.load %arg5[%c31_167] : memref<32xf32, #tpu.memory_space<smem>>
    %477 = vector.broadcast %476 : f32 to vector<16x16xf32>
    %478 = arith.mulf %308, %477 : vector<16x16xf32>
    %479 = arith.addf %475, %478 : vector<16x16xf32>
    %c7_168 = arith.constant 7 : index
    %480 = memref.load %arg6[%c7_168] : memref<8xf32, #tpu.memory_space<smem>>
    %481 = vector.broadcast %480 : f32 to vector<16x16xf32>
    %482 = arith.addf %479, %481 : vector<16x16xf32>
    %cst_169 = arith.constant 0.000000e+00 : f32
    %483 = vector.broadcast %cst_169 : f32 to vector<16x16xf32>
    %484 = arith.maximumf %482, %483 : vector<16x16xf32>
    %485 = vector.shape_cast %330 : vector<16x16xf32> to vector<1x16x16xf32>
    %486 = vector.shape_cast %352 : vector<16x16xf32> to vector<1x16x16xf32>
    %487 = vector.shape_cast %374 : vector<16x16xf32> to vector<1x16x16xf32>
    %488 = vector.shape_cast %396 : vector<16x16xf32> to vector<1x16x16xf32>
    %489 = vector.shape_cast %418 : vector<16x16xf32> to vector<1x16x16xf32>
    %490 = vector.shape_cast %440 : vector<16x16xf32> to vector<1x16x16xf32>
    %491 = vector.shape_cast %462 : vector<16x16xf32> to vector<1x16x16xf32>
    %492 = vector.shape_cast %484 : vector<16x16xf32> to vector<1x16x16xf32>
    %493 = tpu.concatenate %485, %486, %487, %488, %489, %490, %491, %492 in 0 : vector<1x16x16xf32>, vector<1x16x16xf32>, vector<1x16x16xf32>, vector<1x16x16xf32>, vector<1x16x16xf32>, vector<1x16x16xf32>, vector<1x16x16xf32>, vector<1x16x16xf32> -> vector<8x16x16xf32>
    %494 = vector.shape_cast %493 : vector<8x16x16xf32> to vector<8x256xf32>
    %c0_170 = arith.constant 0 : index
    %c0_171 = arith.constant 0 : index
    %c0_172 = arith.constant 0 : index
    %495 = vector.load %arg7[%c0_170, %c0_171, %c0_172] : memref<1x8x256xf32, #tpu.memory_space<vmem>>, vector<1x8x256xf32>
    %496 = vector.shape_cast %495 : vector<1x8x256xf32> to vector<8x256xf32>
    %497 = vector.shape_cast %494 : vector<8x256xf32> to vector<1x8x256xf32>
    tpu.vector_store %arg7[%c0_170, %c0_171, %c0_172], %497 {strides = array<i32>} : memref<1x8x256xf32, #tpu.memory_space<vmem>>, vector<1x8x256xf32>,
    return
  }
  func.func @transform_0(%arg0: i32, %arg1: i32) -> (i32, i32, i32, i32) {
    %c0_i32 = arith.constant 0 : i32
    %c0_i32_0 = arith.constant 0 : i32
    %c0_i32_1 = arith.constant 0 : i32
    %c0_i32_2 = arith.constant 0 : i32
    return %arg0, %c0_i32, %c0_i32_0, %c0_i32_1 : i32, i32, i32, i32
  }
  func.func @transform_1(%arg0: i32, %arg1: i32) -> i32 {
    %c0_i32 = arith.constant 0 : i32
    %c0_i32_0 = arith.constant 0 : i32
    return %c0_i32 : i32
  }
  func.func @transform_2(%arg0: i32, %arg1: i32) -> i32 {
    %c0_i32 = arith.constant 0 : i32
    %c0_i32_0 = arith.constant 0 : i32
    return %c0_i32 : i32
  }
  func.func @transform_3(%arg0: i32, %arg1: i32) -> i32 {
    %c0_i32 = arith.constant 0 : i32
    %c0_i32_0 = arith.constant 0 : i32
    return %c0_i32 : i32
  }
  func.func @transform_4(%arg0: i32, %arg1: i32) -> i32 {
    %c0_i32 = arith.constant 0 : i32
    %c0_i32_0 = arith.constant 0 : i32
    return %c0_i32 : i32
  }
  func.func @transform_5(%arg0: i32, %arg1: i32) -> (i32, i32, i32) {
    %c0_i32 = arith.constant 0 : i32
    %c0_i32_0 = arith.constant 0 : i32
    return %arg0, %c0_i32, %arg1 : i32, i32, i32
  }
}

</mosaic_0001>

<bundles_post_ra>
// kernel: tpu_custom_call.1
= control target key start
LH: loop header
LB: loop body
LE: loop exit
PB: predicated region body
PF: predicated region fallthrough
CT: control target
= control target key end

     0   :  { %s3047_s0 = inlined_call_operand.hbm [shape: f32[2,4,16,16], index: 0, kind: input, shape index: {}]   ;;  %s3048_s1 = inlined_call_operand.hbm [shape: f32[36], index: 1, kind: input, shape index: {}]   ;;  %s3049_s2 = inlined_call_operand.vmem [shape: f32[4], index: 2, kind: input, shape index: {}]   ;;  %s3050_s3 = inlined_call_operand.vmem [shape: f32[32], index: 3, kind: input, shape index: {}]   ;;  %s3051_s4 = inlined_call_operand.vmem [shape: f32[8], index: 4, kind: input, shape index: {}]   ;;  %s3052_s5 = inlined_call_operand.hbm [shape: f32[2,8,256], index: 5, kind: output, shape index: {}]  }
   0x1   :  { %3060 = sst [smem:[#allocation26_spill]] %s3047_s0 }
   0x2   :  { %3061 = sst [smem:[#allocation27_spill]] %s3048_s1 }
   0x3   :  { %3062 = sst [smem:[#allocation28_spill]] %s3049_s2 }
   0x4   :  { %3063 = sst [smem:[#allocation29_spill]] %s3050_s3 }
   0x5   :  { %3064 = sst [smem:[#allocation30_spill]] %s3051_s4 }
   0x6   :  { %10 = vsyncpa [#allocation4], 0 }
   0x7   :  { %12 = vsyncpa [#allocation4 + $0x1], 0 }
   0x8   :  { %13 = vsyncpa [#allocation6], 0 }
   0x9   :  { %14 = vsyncpa [#allocation7], 0 }
   0xa   :  { %15 = vsyncpa [#allocation11], 0 }
   0xb   :  { %16 = vsyncpa [#allocation5], 0 }
   0xc   :  { %18 = vsyncpa [#allocation5 + $0x1], 0  ;;  %s2049_s18 = smov 0   ;;  %s2051_s19 = smov 0  }
   0xd   :  { %s2053_s20 = smov 0   ;;  %s2055_s21 = smov 0  }
   0xe   :  { %s2057_s22 = smov 0   ;;  %s2059_s23 = smov 0  }
   0xf LB: > { %3065 = sst [smem:[#allocation19_spill]] %s1982_s19  ;;  %s1573_s24 = sadd.s32 4294967295, %s1998_s23   ;;  %s1998_s23 = sphi %s2059_s23, %s24_s23   ;;  %s1994_s22 = sphi %s2057_s22, %s3090_s22   ;;  %s1990_s21 = sphi %s2055_s21, %s3089_s21   ;;  %s1986_s20 = sphi %s2053_s20, %s3088_s20   ;;  %s1982_s19 = sphi %s2051_s19, %s3087_s19   ;;  %s1978_s18 = sphi %s2049_s18, %s3086_s18  }
  0x10   : > { %3066 = sst [smem:[#allocation20_spill]] %s1986_s20  ;;  %s1574_s25 = sadd.s32 4294967294, %s1998_s23  }
  0x11   : > { %3067 = sst [smem:[#allocation21_spill]] %s1994_s22  ;;  %p56_p0 = scmp.ne.s32.totalorder %s1982_s19, %s1978_s18 }
  0x12   : > { %3068 = sst [smem:[#allocation22_spill]] %s1998_s23  ;;  %p2083_p1 = scmp.eq.s32.totalorder %s1573_s24, 0 }
  0x13   : > { %p2087_p2 = scmp.eq.s32.totalorder %s1573_s24, 1  ;;  %p172_p3 = scmp.eq.s32.totalorder %s1574_s25, 1 }
  0x14   : > { %p2093_p4 = por %p2083_p1, %p56_p0  ;;  %p1575_p5 = scmp.ge.s32.totalorder %s1998_s23, 1 }
  0x15   : > { %p2098_p6 = por %p172_p3, %p56_p0  ;;  %p179_p7 = scmp.lt.s32.totalorder %s1998_s23, 3 }
  0x16   : > { %s3074_s3 = sld [smem:[#allocation29_spill]]  ;;  %p1580_p9 = scmp.ge.s32.totalorder %s1998_s23, 2 }
  0x17   : > { %s3072_s29 = scalar_select %p2098_p6, 1, 0 }
  0x18   : > { %p2106_p8 = pnand %p1575_p5, %p179_p7  ;;  %s3076_s1 = sld [smem:[#allocation27_spill]] }
  0x19   : > { %3073 = sst [smem:[#allocation23_spill]] %s3072_s29  ;;  %s2000_s15 = smov [#allocation10]  }
  0x1a   : > { %p1716_p10 = pneg %p2106_p8  ;;  %s3077_s2 = sld [smem:[#allocation28_spill]] }
  0x1b   : > { %s2001_s16 = smov [#allocation8]   ;;  %s3078_s4 = sld [smem:[#allocation30_spill]] }
  0x1c   : > { %s211_s7 = sshll.u32 %s3074_s3, 4  ;;  %p1717_p11 = pnand %p1716_p10, %p2083_p1  ;;  %s212_s7 = int_to_ptr.vmem [resolvable:$true] %s211_s7 }
  0x1d   : > { %s2002_s30 = smov [#allocation9]   ;;  %s2003_s6 = smov [#allocation12]  }
  0x1e   : > { %s191_s11 = sshll.u32 %s3076_s1, 4  ;;  %s36_s9 = sadd.s32 1, %s1994_s22  ;;  %s192_s11 = int_to_ptr.hbm [resolvable:$true] %s191_s11 }
  0x1f   : > { %1725 = dma.vmem_to_smem (!%p1717_p11), %s212_s7, 16, %s2000_s15, [#allocation11]  }
  0x20   : > { %s201_s14 = sshll.u32 %s3077_s2, 4  ;;  %s43_s10 = sadd.s32 1, %s1986_s20  ;;  %s202_s14 = int_to_ptr.vmem [resolvable:$true] %s201_s14 }
  0x21   : > { %1719 = dma.hbm_to_smem (!%p1717_p11), %s192_s11, 16, %s2001_s16, [#allocation6]  }
  0x22   : > { %s221_s25 = sshll.u32 %s3078_s4, 4  ;;  %p38_p12 = scmp.ge.s32.totalorder %s36_s9, 2  ;;  %s222_s25 = int_to_ptr.vmem [resolvable:$true] %s221_s25 }
  0x23   : > { %1722 = dma.vmem_to_smem (!%p1717_p11), %s202_s14, 16, %s2002_s30, [#allocation7]  }
  0x24   : > { %1728 = dma.vmem_to_smem (!%p1717_p11), %s222_s25, 16, %s2003_s6, [#allocation11]  }
  0x25   : > { %p50_p13 = scmp.ne.s32.totalorder %s1986_s20, %s1982_s19  ;;  %p51_p0 = scmp.eq.s32.totalorder %s1998_s23, 0 }
  0x26   : > { %p1741_p3 = scmp.lt.s32.totalorder %s1998_s23, 2  ;;  %s3092_s9 = smov (%p38_p12, %s36_s9), 0 }
  0x27   : > { %3079 = sst [smem:[#allocation24_spill]] %s3092_s9  ;;  %p2132_p5 = por %p51_p0, %p50_p13 }
  0x28   : > { %p2138_p7 = por %p2087_p2, %p50_p13  ;;  %s40_s12 = ssub.s32 %s1994_s22, %s3092_s9 }
  0x29   : > { %s232_s13 = sand.u32 1, %s1986_s20   ;;  %p41_p10 = scmp.eq.s32.totalorder %s40_s12, 0 }
  0x2a   : > { %s1581_s14 = sshll.u32 %s232_s13, 6  ;;  %s1694_s15 = sshll.u32 %s1994_s22, 6 }
  0x2b   : > { %s2147_s16 = scalar_select %p41_p10, %s1986_s20, %s43_s10  }
  0x2c   : > { %s3083_s0 = sld [smem:[#allocation26_spill]]  ;;  %s236_s6 = scalar_lea.vmem [#allocation3], %s1581_s14 }
  0x2d   : > { %3082 = sst [smem:[#allocation25_spill]] %s2147_s16  ;;  %s244_s1 = sshll.u32 %s236_s6, 4  ;;  %s245_s1 = int_to_ptr.vmem [resolvable:$true] %s244_s1 }
  0x2e   : > { %p1730_p2 = pnand %p1741_p3, %p2132_p5  ;;  %s233_s27 = scalar_lea.sflag [#allocation4], %s232_s13 }
  0x2f   : > { %s2004_s2 = smov 128   ;;  %s2005_s3 = smov 8  }
  0x30   : > { %256 = sbr.rel (%p2106_p8) target bundleno = 611 (0x263), region = 40  ;;  %s2159_s10 = sand.u32 (!%p2106_p8), 1, %s1982_s19  }
  0x31   : > { %s1585_s12 = sshll.u32 (!%p2106_p8), %s2159_s10, 6  ;;  %s259_s14 = scalar_lea.sflag (!%p2106_p8), [#allocation4], %s2159_s10 }
  0x32   : > { %s241_s25 = scalar_lea.hbm %s3083_s0, %s1694_s15  ;;  %s262_s15 = scalar_lea.vmem (!%p2106_p8), [#allocation3], %s1585_s12 }
  0x33   : > { %s242_s30 = sshll.u32 %s241_s25, 4  ;;  %s243_s30 = int_to_ptr.hbm [resolvable:$true] %s242_s30 }
  0x34   : > { %1732 = dma.hbm_to_vmem [thread:$0]  (!%p1730_p2), %s243_s30, 1024, %s245_s1, %s233_s27, %s2004_s2, %s2004_s2, %s2005_s3  }
  0x35   : > { %1957 = dma.done.wait (%p2093_p4), %s259_s14, 1024  }
  0x36   : > { %1959 = vsyncadd (%p2093_p4), %s259_s14, 4294966272 }
  0x37   : > { %1961 = dma.done.wait (%p2083_p1), [#allocation6], 16  }
  0x38   : > { %1963 = vsyncadd (%p2083_p1), [#allocation6], 4294967280 }
  0x39   : > { %1965 = dma.done.wait (%p2083_p1), [#allocation7], 16  }
  0x3a   : > { %1967 = vsyncadd (%p2083_p1), [#allocation7], 4294967280 }
  0x3b   : > { %1969 = dma.done.wait (%p2083_p1), [#allocation11], 32  }
  0x3c   : > { %1971 = vsyncadd (%p2083_p1), [#allocation11], 4294967264 }
  0x3d   : > { %288 = sfence }
  0x3e   : > { %v330_v0 = vld [vmem:[%s262_s15] sm:$0xff]  ;;  %v332_v1 = vld [vmem:[%s262_s15 + $0x10] sm:$0xff]  ;;  %s2006_s1 = smov 1   ;;  %v331_v3 = vld [vmem:[%s262_s15 + $0x8] sm:$0xff]  ;;  %vm316_vm0 = vcmask 146432   ;;  %v2007_v8 = vmov 0.0  }
  0x3f   : > { %346 = vrot.lane.b32.xlu0 %v330_v0, %s2006_s1  ;;  %350 = vrot.lane.b32.xlu1 %v332_v1, %s2006_s1  ;;  %v334_v2 = vld [vmem:[%s262_s15 + $0x20] sm:$0xff]  ;;  %v333_v4 = vld [vmem:[%s262_s15 + $0x18] sm:$0xff]  ;;  %317 = vst.msk [vmem:[#allocation2] sm:$0xff] %vm316_vm0, %v2007_v8  ;;  %vm319_vm1 = vcmask 140288   ;;  %s2179_s2 = sld [smem:[#allocation8 + $0x8]]  ;;  %vm370_vm2 = vcmask 138248  }
  0x40   : > { %354 = vrot.lane.b32.xlu2 %v334_v2, %s2006_s1  ;;  %v335_v5 = vld [vmem:[%s262_s15 + $0x28] sm:$0xff]  ;;  %v336_v6 = vld [vmem:[%s262_s15 + $0x30] sm:$0xff]  ;;  %v337_v7 = vld [vmem:[%s262_s15 + $0x38] sm:$0xff]  ;;  %318 = vst.msk [vmem:[#allocation2 + $0x8] sm:$0xff] %vm316_vm0, %v2007_v8  ;;  %s1591_s3 = sld [smem:[#allocation8 + $0x4]]  ;;  %s2008_s28 = smov 126  }
  0x41   : > { %321 = vst.msk [vmem:[#allocation2 + $0x18] sm:$0xff] %vm316_vm0, %v2007_v8  ;;  %s1596_s26 = sld [smem:[#allocation8 + $0x10]]  ;;  %s2009_s8 = smov 127   ;;  %vm1092_vm3 = vcmask 1047556   ;;  %vm1372_vm4 = vcmask 130048   ;;  %vm1374_vm5 = vcmask 261120  }
  0x42   : > { %322 = vst.msk [vmem:[#allocation2 + $0x20] sm:$0xff] %vm316_vm0, %v2007_v8  ;;  %s2194_s7 = sld [smem:[#allocation8 + $0x1c]]  ;;  %vm1376_vm6 = vcmask 392192   ;;  %vm1378_vm7 = vcmask 523264   ;;  %vm1382_vm8 = vcmask 785408   ;;  %vm1380_vm9 = vcmask 654336  }
  0x43   : > { %324 = vst.msk [vmem:[#allocation2 + $0x30] sm:$0xff] %vm316_vm0, %v2007_v8  ;;  %s1597_s13 = sld [smem:[#allocation8 + $0x14]]  ;;  %vm1384_vm10 = vcmask 916480  }
  0x44   : > { %325 = vst.msk [vmem:[#allocation2 + $0x38] sm:$0xff] %vm316_vm0, %v2007_v8  ;;  %s1602_s17 = sld [smem:[#allocation8 + $0x20]] }
  0x45   : > { %327 = vst.msk [vmem:[#allocation2 + $0x48] sm:$0xff] %vm316_vm0, %v2007_v8  ;;  %v404_v12 = vstv %s2179_s2  ;;  %s2217_s24 = sld [smem:[#allocation8 + $0x9]] }
  0x46   : > { %328 = vst.msk [vmem:[#allocation2 + $0x50] sm:$0xff] %vm316_vm0, %v2007_v8  ;;  %v390_v13 = vstv %s1591_s3  ;;  %s1606_s25 = sld [smem:[#allocation8 + $0x5]] }
  0x47   : > { %348 = vrot.lane.b32.xlu0 %v331_v3, %s2006_s1  ;;  %352 = vrot.lane.b32.xlu1 %v333_v4, %s2006_s1  ;;  %320 = vst.msk [vmem:[#allocation2 + $0x10] sm:$0x3] %vm319_vm1, %v2007_v8  ;;  %v428_v22 = vstv %s1596_s26  ;;  %s1611_s30 = sld [smem:[#allocation8 + $0x11]] }
  0x48   : > { %356 = vrot.lane.b32.xlu2 %v335_v5, %s2006_s1  ;;  %323 = vst.msk [vmem:[#allocation2 + $0x28] sm:$0x3] %vm319_vm1, %v2007_v8  ;;  %v466_v28 = vstv %s2194_s7  ;;  %s1622_s6 = sld [smem:[#allocation8 + $0x6]] }
  0x49   : > { %326 = vst.msk [vmem:[#allocation2 + $0x40] sm:$0x3] %vm319_vm1, %v2007_v8  ;;  %v442_v29 = vstv %s1597_s13  ;;  %s1612_s27 = sld [smem:[#allocation8 + $0x15]] }
  0x4a   : > { %329 = vst.msk [vmem:[#allocation2 + $0x58] sm:$0x3] %vm319_vm1, %v2007_v8  ;;  %v480_v36 = vstv %s1602_s17  ;;  %s1623_s12 = sld [smem:[#allocation8 + $0xa]] }
  0x4b   : > { %v522_v41 = vstv %s2217_s24  ;;  %s1639_s14 = sld [smem:[#allocation8 + $0xb]] }
  0x4c   : > { %v508_v42 = vstv %s1606_s25  ;;  %s1638_s15 = sld [smem:[#allocation8 + $0x7]] }
  0x4d   : > { %v546_v48 = vstv %s1611_s30  ;;  %s1643_s2 = sld [smem:[#allocation8 + $0x13]] }
  0x4e   : > { %v626_v53 = vstv %s1622_s6  ;;  %s1628_s3 = sld [smem:[#allocation8 + $0x16]] }
  0x4f   : > { %358 = vrot.lane.b32.xlu0 %v336_v6, %s2006_s1  ;;  %360 = vrot.lane.b32.xlu1 %v337_v7, %s2006_s1  ;;  %v560_v56 = vstv %s1612_s27  ;;  %s1627_s1 = sld [smem:[#allocation8 + $0x12]] }
  0x50   : > { %v640_v60 = vstv %s1623_s12  ;;  %s1616_s26 = sld [smem:[#allocation8 + $0x1d]] }
  0x51   : > { %v758_v1 = vstv %s1639_s14  ;;  %s2290_s7 = sld [smem:[#allocation8]] }
  0x52   : > { %v744_v2 = vstv %s1638_s15  ;;  %s2298_s13 = sld [smem:[#allocation8 + $0x21]] }
  0x53   : > { %s1644_s17 = sld [smem:[#allocation8 + $0x17]] }
  0x54   : > { %s1632_s24 = sld [smem:[#allocation8 + $0x1e]] }
  0x55   : > { %v664_v8 = vstv %s1627_s1  ;;  %s2321_s25 = sld [smem:[#allocation8 + $0x1f]] }
  0x56   : > { %s1633_s30 = sld [smem:[#allocation8 + $0x22]] }
  0x57   : > { %s2328_s6 = sld [smem:[#allocation8 + $0xc]] }
  0x58   : > { %s2336_s27 = sld [smem:[#allocation8 + $0x23]] }
  0x59   : > { %s2341_s12 = sld [smem:[#allocation8 + $0x1]] }
  0x5a   : > { %s1600_s14 = sld [smem:[#allocation8 + $0x18]] }
  0x5b   : > { %s1615_s15 = sld [smem:[#allocation8 + $0x19]] }
  0x5c   : > { %s1626_s1 = sld [smem:[#allocation8 + $0xe]] }
  0x5d   : > { %s2436_s0 = sld [smem:[#allocation10 + $0x15]] }
  0x5e   : > { %s2445_s4 = sld [smem:[#allocation10 + $0x1d]] }
  0x5f   : > { %s2447_s9 = sld [smem:[#allocation9 + $0x2]] }
  0x60   : > { %s2452_s22 = sld [smem:[#allocation10 + $0x2]] }
  0x61   : > { %s2461_s16 = sld [smem:[#allocation10 + $0xa]] }
  0x62   : > { %s2466_s20 = sld [smem:[#allocation10 + $0xe]] }
  0x63   : > { %s2495_s19 = sld [smem:[#allocation10 + $0x7]] }
  0x64   : > { %s2546_s23 = sld [smem:[#allocation12 + $0x2]] }
  0x65   : > { %s2550_s29 = sld [smem:[#allocation12 + $0x3]] }
  0x9a   : > { %v355_v11 = vpop.permute.xlu2 %354 }
  0x9b   : > { %375 = vst.msk [vmem:[#allocation2 + $0x31] sm:$0xff] %vm370_vm2, %v355_v11 }
  0xa2   : > { %v357_v19 = vpop.permute.xlu2 %356  ;;  %v2248_v52 = vld [vmem:[#allocation2 + $0x30] sm:$0xff] }
  0xa3   : > { %376 = vst.msk [vmem:[#allocation2 + $0x39] sm:$0xff] %vm370_vm2, %v357_v19  ;;  %v627_v55 = vmul.f32 %v2248_v52, %v626_v53  ;;  %v641_v5 = vmul.f32 %v2248_v52, %v640_v60 }
  0xaa   : > { %v2258_v59 = vld [vmem:[#allocation2 + $0x38] sm:$0xff] }
  0xab   : > { %v642_v62 = vmul.f32 %v2258_v59, %v640_v60  ;;  %v628_v63 = vmul.f32 %v2258_v59, %v626_v53  ;;  %v2276_v7 = vld [vmem:[#allocation2 + $0x39] sm:$0xff]  ;;  %v820_v53 = vstv %s2321_s25  ;;  %v422_v60 = vstv %s2328_s6  ;;  %s2403_s25 = sld [smem:[#allocation10 + $0x8]] }
  0xac   : > { %s2407_s6 = sld [smem:[#allocation10 + $0x10]] }
  0xb1   : > { %v347_v9 = vpop.permute.xlu0 %346  ;;  %v351_v10 = vpop.permute.xlu1 %350 }
  0xb2   : > { %371 = vst.msk [vmem:[#allocation2 + $0x1] sm:$0xff] %vm370_vm2, %v347_v9 }
  0xb3   : > { %373 = vst.msk [vmem:[#allocation2 + $0x19] sm:$0xff] %vm370_vm2, %v351_v10  ;;  %v666_v10 = vmul.f32 %v2276_v7, %v664_v8 }
  0xb9   : > { %v349_v14 = vpop.permute.xlu0 %348  ;;  %v2185_v15 = vld [vmem:[#allocation2] sm:$0xff]  ;;  %v353_v16 = vpop.permute.xlu1 %352 }
  0xba   : > { %372 = vst.msk [vmem:[#allocation2 + $0x9] sm:$0xff] %vm370_vm2, %v349_v14  ;;  %v405_v17 = vmul.f32 %v404_v12, %v2185_v15  ;;  %v391_v18 = vmul.f32 %v390_v13, %v2185_v15  ;;  %v2206_v26 = vld [vmem:[#allocation2 + $0x1] sm:$0xff]  ;;  %v2229_v40 = vld [vmem:[#allocation2 + $0x18] sm:$0xff]  ;;  %v782_v14 = vstv %s1643_s2  ;;  %s2373_s2 = sld [smem:[#allocation8 + $0x3]] }
  0xbb   : > { %374 = vst.msk [vmem:[#allocation2 + $0x21] sm:$0xff] %vm370_vm2, %v353_v16  ;;  %v429_v30 = vmul.f32 %v2206_v26, %v428_v22  ;;  %v443_v32 = vmul.f32 %v2206_v26, %v442_v29  ;;  %v523_v43 = vmul.f32 %v2229_v40, %v522_v41  ;;  %v509_v44 = vmul.f32 %v2229_v40, %v508_v42  ;;  %v2250_v54 = vld [vmem:[#allocation2 + $0x19] sm:$0xff] }
  0xbc   : > { %409 = vrot.lane.b32.xlu1 %v405_v17, %s2008_s28  ;;  %395 = vrot.lane.b32.xlu2 %v391_v18, %s2009_s8  ;;  %v547_v57 = vmul.f32 %v2250_v54, %v546_v48  ;;  %v561_v58 = vmul.f32 %v2250_v54, %v560_v56  ;;  %v678_v16 = vstv %s1628_s3  ;;  %s2379_s3 = sld [smem:[#allocation8 + $0xf]] }
  0xc1   : > { %v2196_v20 = vld [vmem:[#allocation2 + $0x8] sm:$0xff]  ;;  %v359_v33 = vpop.permute.xlu0 %358  ;;  %v361_v34 = vpop.permute.xlu1 %360 }
  0xc2   : > { %v2198_v21 = vld [vmem:[#allocation2 + $0x9] sm:$0xff]  ;;  %v392_v23 = vmul.f32 %v390_v13, %v2196_v20  ;;  %v406_v25 = vmul.f32 %v404_v12, %v2196_v20  ;;  %377 = vst.msk [vmem:[#allocation2 + $0x49] sm:$0xff] %vm370_vm2, %v359_v33  ;;  %v2238_v46 = vld [vmem:[#allocation2 + $0x21] sm:$0xff]  ;;  %v2284_v12 = vld [vmem:[#allocation2 + $0x31] sm:$0xff] }
  0xc3   : > { %v430_v24 = vmul.f32 %v2198_v21, %v428_v22  ;;  %v2208_v27 = vld [vmem:[#allocation2 + $0x2] sm:$0xff]  ;;  %v2220_v35 = vld [vmem:[#allocation2 + $0xa] sm:$0xff]  ;;  %378 = vst.msk [vmem:[#allocation2 + $0x51] sm:$0xff] %vm370_vm2, %v361_v34  ;;  %v444_v37 = vmul.f32 %v2198_v21, %v442_v29  ;;  %v548_v49 = vmul.f32 %v2238_v46, %v546_v48  ;;  %v562_v61 = vmul.f32 %v2238_v46, %v560_v56  ;;  %v2310_v34 = vld [vmem:[#allocation2 + $0x1a] sm:$0xff] }
  0xc4   : > { %397 = vrot.lane.b32.xlu0 %v392_v23, %s2009_s8  ;;  %411 = vrot.lane.b32.xlu2 %v406_v25, %s2008_s28  ;;  %v467_v31 = vmul.f32 %v2208_v27, %v466_v28  ;;  %v482_v38 = vmul.f32 %v2220_v35, %v480_v36  ;;  %v468_v39 = vmul.f32 %v2220_v35, %v466_v28  ;;  %v2240_v47 = vld [vmem:[#allocation2 + $0x20] sm:$0xff]  ;;  %v384_v29 = vstv %s2290_s7  ;;  %s2392_s7 = sld [smem:[#allocation8 + $0x1b]] }
  0xc5   : > { %435 = vrot.lane.b32.xlu1 %v430_v24, %s2009_s8  ;;  %v481_v45 = vmul.f32 %v2208_v27, %v480_v36  ;;  %v510_v50 = vmul.f32 %v2240_v47, %v508_v42  ;;  %v524_v51 = vmul.f32 %v2240_v47, %v522_v41  ;;  %v665_v17 = vmul.f32 %v2284_v12, %v664_v8  ;;  %v2296_v22 = vld [vmem:[#allocation2 + $0x22] sm:$0xff]  ;;  %v2319_v42 = vld [vmem:[#allocation2 + $0x3a] sm:$0xff] }
  0xc6   : > { %v679_v19 = vmul.f32 %v2284_v12, %v678_v16  ;;  %v584_v24 = vstv %s1616_s26  ;;  %v680_v25 = vmul.f32 %v2276_v7, %v678_v16  ;;  %v598_v36 = vstv %s2298_s13  ;;  %s2390_s26 = sld [smem:[#allocation8 + $0x1a]] }
  0xc7   : > { %v586_v28 = vmul.f32 %v2296_v22, %v584_v24  ;;  %v600_v48 = vmul.f32 %v2296_v22, %v598_v36  ;;  %s2394_s13 = sld [smem:[#allocation9]] }
  0xc9   : > { %v2266_v0 = vld [vmem:[#allocation2 + $0x48] sm:$0xff] }
  0xca   : > { %v759_v3 = vmul.f32 %v2266_v0, %v758_v1  ;;  %v745_v4 = vmul.f32 %v2266_v0, %v744_v2  ;;  %v2274_v6 = vld [vmem:[#allocation2 + $0x50] sm:$0xff] }
  0xcb   : > { %v746_v9 = vmul.f32 %v2274_v6, %v744_v2  ;;  %v760_v11 = vmul.f32 %v2274_v6, %v758_v1  ;;  %v2286_v13 = vld [vmem:[#allocation2 + $0x49] sm:$0xff]  ;;  %v2300_v23 = vld [vmem:[#allocation2 + $0x51] sm:$0xff]  ;;  %v423_v2 = vmul.f32 %v2206_v26, %v422_v60 }
  0xcc   : > { %433 = vrot.lane.b32.xlu0 %v429_v30, %s2009_s8  ;;  %447 = vrot.lane.b32.xlu2 %v443_v32, %s2008_s28  ;;  %v783_v18 = vmul.f32 %v2286_v13, %v782_v14  ;;  %v784_v30 = vmul.f32 %v2300_v23, %v782_v14  ;;  %v2347_v1 = vld [vmem:[#allocation2 + $0x52] sm:$0xff] }
  0xcd   : > { %471 = vrot.lane.b32.xlu1 %v467_v31, %s2009_s8  ;;  %v385_v31 = vmul.f32 %v384_v29, %v2185_v15 }
  0xd4   : > { %449 = vrot.lane.b32.xlu0 %v444_v37, %s2008_s28  ;;  %473 = vrot.lane.b32.xlu2 %v468_v39, %s2009_s8  ;;  %v796_v37 = vstv %s1644_s17  ;;  %v599_v39 = vmul.f32 %v2310_v34, %v598_v36  ;;  %s2398_s17 = sld [smem:[#allocation10]] }
  0xd5   : > { %487 = vrot.lane.b32.xlu1 %v482_v38, %s2008_s28  ;;  %v585_v38 = vmul.f32 %v2310_v34, %v584_v24  ;;  %v797_v41 = vmul.f32 %v2286_v13, %v796_v37 }
  0xdc   : > { %485 = vrot.lane.b32.xlu0 %v481_v45, %s2008_s28  ;;  %513 = vrot.lane.b32.xlu2 %v509_v44, %s2009_s8  ;;  %v798_v44 = vmul.f32 %v2300_v23, %v796_v37 }
  0xdd   : > { %527 = vrot.lane.b32.xlu1 %v523_v43, %s2008_s28  ;;  %v702_v43 = vstv %s1632_s24  ;;  %s2400_s24 = sld [smem:[#allocation10 + $0x4]] }
  0xde   : > { %v704_v45 = vmul.f32 %v2319_v42, %v702_v43 }
  0xe4   : > { %515 = vrot.lane.b32.xlu0 %v510_v50, %s2009_s8  ;;  %529 = vrot.lane.b32.xlu2 %v524_v51, %s2008_s28  ;;  %v2331_v50 = vld [vmem:[#allocation2 + $0x32] sm:$0xff]  ;;  %v2333_v51 = vld [vmem:[#allocation2 + $0x4a] sm:$0xff] }
  0xe5   : > { %553 = vrot.lane.b32.xlu1 %v548_v49, %s2009_s8  ;;  %v703_v56 = vmul.f32 %v2331_v50, %v702_v43 }
  0xec   : > { %551 = vrot.lane.b32.xlu0 %v547_v57, %s2009_s8  ;;  %565 = vrot.lane.b32.xlu2 %v561_v58, %s2008_s28  ;;  %v821_v57 = vmul.f32 %v2333_v51, %v820_v53 }
  0xed   : > { %631 = vrot.lane.b32.xlu1 %v627_v55, %s2009_s8  ;;  %v716_v55 = vstv %s1633_s30  ;;  %s2405_s30 = sld [smem:[#allocation10 + $0xc]] }
  0xee   : > { %v717_v58 = vmul.f32 %v2331_v50, %v716_v55 }
  0xf4   : > { %567 = vrot.lane.b32.xlu0 %v562_v61, %s2008_s28  ;;  %633 = vrot.lane.b32.xlu2 %v628_v63, %s2009_s8 }
  0xf5   : > { %647 = vrot.lane.b32.xlu1 %v642_v62, %s2008_s28 }
  0xfc   : > { %645 = vrot.lane.b32.xlu0 %v641_v5, %s2008_s28  ;;  %749 = vrot.lane.b32.xlu2 %v745_v4, %s2009_s8  ;;  %v718_v5 = vmul.f32 %v2319_v42, %v716_v55 }
  0xfd   : > { %763 = vrot.lane.b32.xlu1 %v759_v3, %s2008_s28  ;;  %v834_v3 = vstv %s2336_s27  ;;  %s2409_s27 = sld [smem:[#allocation10 + $0x14]] }
  0xfe   : > { %v836_v8 = vmul.f32 %v2347_v1, %v834_v3 }
 0x104   : > { %751 = vrot.lane.b32.xlu0 %v746_v9, %s2009_s8  ;;  %765 = vrot.lane.b32.xlu2 %v760_v11, %s2008_s28  ;;  %v822_v9 = vmul.f32 %v2347_v1, %v820_v53  ;;  %v386_v11 = vmul.f32 %v384_v29, %v2196_v20 }
 0x105   : > { %671 = vrot.lane.b32.xlu1 %v666_v10, %s2009_s8  ;;  %v502_v10 = vstv %s2341_s12  ;;  %s2412_s12 = sld [smem:[#allocation10 + $0x18]] }
 0x106   : > { %v503_v26 = vmul.f32 %v2229_v40, %v502_v10 }
 0x10c   : > { %669 = vrot.lane.b32.xlu0 %v665_v17, %s2009_s8  ;;  %683 = vrot.lane.b32.xlu2 %v679_v19, %s2008_s28 }
 0x10d   : > { %787 = vrot.lane.b32.xlu1 %v783_v18, %s2009_s8 }
 0x114   : > { %685 = vrot.lane.b32.xlu0 %v680_v25, %s2008_s28  ;;  %789 = vrot.lane.b32.xlu2 %v784_v30, %s2009_s8  ;;  %v424_v25 = vmul.f32 %v2198_v21, %v422_v60 }
 0x115   : > { %591 = vrot.lane.b32.xlu1 %v586_v28, %s2009_s8  ;;  %v835_v28 = vmul.f32 %v2333_v51, %v834_v3 }
 0x116   : > { %v396_v32 = vpop.permute.xlu2 %395 }
 0x117   : > { %v401_v33 = vadd.f32 %v396_v32, %v385_v31 }
 0x11c   : > { %589 = vrot.lane.b32.xlu0 %v585_v38, %s2009_s8  ;;  %801 = vrot.lane.b32.xlu2 %v797_v41, %s2008_s28 }
 0x11d   : > { %603 = vrot.lane.b32.xlu1 %v599_v39, %s2008_s28 }
 0x11e   : > { %v412_v15 = vpop.permute.xlu2 %411 }
 0x124   : > { %803 = vrot.lane.b32.xlu0 %v798_v44, %s2008_s28  ;;  %605 = vrot.lane.b32.xlu2 %v600_v48, %s2008_s28 }
 0x125   : > { %709 = vrot.lane.b32.xlu1 %v704_v45, %s2009_s8 }
 0x126   : > { %v448_v49 = vpop.permute.xlu2 %447 }
 0x12c   : > { %707 = vrot.lane.b32.xlu0 %v703_v56, %s2009_s8  ;;  %721 = vrot.lane.b32.xlu2 %v717_v58, %s2008_s28 }
 0x12d   : > { %825 = vrot.lane.b32.xlu1 %v821_v57, %s2009_s8 }
 0x12e   : > { %v410_v61 = vpop.permute.xlu1 %409  ;;  %v474_v63 = vpop.permute.xlu2 %473 }
 0x12f   : > { %v415_v62 = vadd.f32 %v410_v61, %v401_v33  ;;  %v460_v33 = vstv %s1600_s14  ;;  %s2414_s14 = sld [smem:[#allocation10 + $0x1c]] }
 0x130   : > { %v461_v40 = vmul.f32 %v2208_v27, %v460_v33  ;;  %v462_v21 = vmul.f32 %v2220_v35, %v460_v33 }
 0x131   : > { %v425_v4 = vadd.f32 %v423_v2, %v415_v62  ;;  %v504_v62 = vmul.f32 %v2240_v47, %v502_v10 }
 0x134   : > { %723 = vrot.lane.b32.xlu0 %v718_v5, %s2008_s28  ;;  %827 = vrot.lane.b32.xlu2 %v822_v9, %s2009_s8  ;;  %s1610_s8 = sld [smem:[#allocation8 + $0xd]] }
 0x135   : > { %841 = vrot.lane.b32.xlu1 %v836_v8, %s2008_s28 }
 0x136   : > { %v398_v14 = vpop.permute.xlu0 %397  ;;  %v514_v18 = vpop.permute.xlu2 %513 }
 0x137   : > { %v436_v16 = vpop.permute.xlu1 %435  ;;  %v402_v17 = vadd.f32 %v398_v14, %v386_v11  ;;  %v519_v19 = vadd.f32 %v514_v18, %v503_v26 }
 0x139   : > { %v416_v24 = vadd.f32 %v412_v15, %v402_v17 }
 0x13a   : > { %v540_v53 = vstv %s1610_s8  ;;  %s2416_s8 = sld [smem:[#allocation9 + $0x1]] }
 0x13b   : > { %v426_v30 = vadd.f32 %v424_v25, %v416_v24  ;;  %v541_v60 = vmul.f32 %v2250_v54, %v540_v53  ;;  %v542_v5 = vmul.f32 %v2238_v46, %v540_v53  ;;  %v578_v54 = vstv %s1615_s15  ;;  %s2422_s15 = sld [smem:[#allocation10 + $0x5]] }
 0x13c   : > { %839 = vrot.lane.b32.xlu0 %v835_v28, %s2008_s28  ;;  %s1621_s28 = sld [smem:[#allocation8 + $0x2]] }
 0x13d   : > { %v440_v31 = vadd.f32 %v436_v16, %v426_v30  ;;  %v658_v30 = vstv %s1626_s1  ;;  %s2426_s1 = sld [smem:[#allocation10 + $0x9]] }
 0x13e   : > { %v434_v32 = vpop.permute.xlu0 %433  ;;  %v530_v36 = vpop.permute.xlu2 %529  ;;  %v660_v33 = vmul.f32 %v2276_v7, %v658_v30 }
 0x13f   : > { %v472_v20 = vpop.permute.xlu1 %471  ;;  %v439_v29 = vadd.f32 %v434_v32, %v425_v4 }
 0x141   : > { %v453_v37 = vadd.f32 %v448_v49, %v439_v29  ;;  %v738_v29 = vstv %s2373_s2  ;;  %s2428_s2 = sld [smem:[#allocation10 + $0xd]] }
 0x142   : > { %v620_v8 = vstv %s1621_s28  ;;  %s2420_s28 = sld [smem:[#allocation10 + $0x1]] }
 0x143   : > { %v463_v38 = vadd.f32 %v461_v40, %v453_v37  ;;  %v621_v14 = vmul.f32 %v2248_v52, %v620_v8  ;;  %v622_v46 = vmul.f32 %v2258_v59, %v620_v8  ;;  %v739_v59 = vmul.f32 %v2266_v0, %v738_v29 }
 0x144   : > { %v776_v40 = vstv %s2379_s3  ;;  %v740_v0 = vmul.f32 %v2274_v6, %v738_v29  ;;  %s2430_s3 = sld [smem:[#allocation10 + $0x11]] }
 0x145   : > { %v477_v39 = vadd.f32 %v472_v20, %v463_v38  ;;  %v580_v20 = vmul.f32 %v2296_v22, %v578_v54 }
 0x146   : > { %v450_v41 = vpop.permute.xlu0 %449  ;;  %v566_v44 = vpop.permute.xlu2 %565 }
 0x147   : > { %v488_v15 = vpop.permute.xlu1 %487  ;;  %v454_v43 = vadd.f32 %v450_v41, %v440_v31  ;;  %v948_v29 = vstv %s2428_s2  ;;  %s2525_s2 = sld [smem:[#allocation10 + $0x16]] }
 0x149   : > { %v464_v45 = vadd.f32 %v462_v21, %v454_v43  ;;  %v659_v43 = vmul.f32 %v2284_v12, %v658_v30 }
 0x14b   : > { %v478_v48 = vadd.f32 %v474_v63, %v464_v45 }
 0x14d   : > { %v2365_v55 = vadd.f32 %v488_v15, %v478_v48 }
 0x14e   : > { %v486_v56 = vpop.permute.xlu0 %485  ;;  %v634_v27 = vpop.permute.xlu2 %633 }
 0x14f   : > { %v528_v57 = vpop.permute.xlu1 %527  ;;  %v2367_v58 = vadd.f32 %v486_v56, %v477_v39  ;;  %v638_v52 = vadd.f32 %v634_v27, %v622_v46  ;;  %v778_v56 = vmul.f32 %v2300_v23, %v776_v40  ;;  %v1032_v46 = vstv %s2412_s12  ;;  %s2485_s12 = sld [smem:[#allocation10 + $0x12]] }
 0x150   : > { %v533_v49 = vadd.f32 %v528_v57, %v519_v19  ;;  %v579_v19 = vmul.f32 %v2310_v34, %v578_v54  ;;  %v912_v54 = vstv %s2403_s25  ;;  %s2582_s25 = sld [smem:[#allocation12 + $0x5]] }
 0x152   : > { %v543_v61 = vadd.f32 %v541_v60, %v533_v49  ;;  %v814_v60 = vstv %s2392_s7  ;;  %s2565_s7 = sld [smem:[#allocation12 + $0x4]] }
 0x156   : > { %v516_v35 = vpop.permute.xlu0 %515  ;;  %v750_v63 = vpop.permute.xlu2 %749 }
 0x157   : > { %v554_v2 = vpop.permute.xlu1 %553  ;;  %v520_v3 = vadd.f32 %v516_v35, %v504_v62  ;;  %v755_v38 = vadd.f32 %v750_v63, %v739_v59  ;;  %v815_v63 = vmul.f32 %v2333_v51, %v814_v60 }
 0x159   : > { %v534_v4 = vadd.f32 %v530_v36, %v520_v3 }
 0x15b   : > { %v544_v9 = vadd.f32 %v542_v5, %v534_v4  ;;  %v494_v4 = vstv %s2394_s13  ;;  %s2457_s13 = sld [smem:[#allocation10 + $0x6]] }
 0x15d   : > { %v558_v11 = vadd.f32 %v554_v2, %v544_v9 }
 0x15e   : > { %v552_v16 = vpop.permute.xlu0 %551  ;;  %v766_v47 = vpop.permute.xlu2 %765 }
 0x15f   : > { %v632_v26 = vpop.permute.xlu1 %631  ;;  %v557_v17 = vadd.f32 %v552_v16, %v543_v61  ;;  %v696_v61 = vstv %s2390_s26  ;;  %s2439_s26 = sld [smem:[#allocation10 + $0x19]]  ;;  %v852_v16 = vstv %s2398_s17 }
 0x160   : > { %v637_v18 = vadd.f32 %v632_v26, %v621_v14  ;;  %v697_v3 = vmul.f32 %v2331_v50, %v696_v61  ;;  %v2450_v50 = vadd.f32 %v494_v4, %v2365_v55  ;;  %v698_v14 = vmul.f32 %v2319_v42, %v696_v61  ;;  %s2570_s17 = sld [smem:[#allocation10 + $0x1a]] }
 0x161   : > { %v571_v10 = vadd.f32 %v566_v44, %v557_v17  ;;  %v777_v44 = vmul.f32 %v2286_v13, %v776_v40  ;;  %v882_v26 = vstv %s2400_s24  ;;  %v1002_v42 = vstv %s2409_s27  ;;  %s2572_s24 = sld [smem:[#allocation10 + $0x17]] }
 0x162   : > { %v884_v59 = vmul.f32 %v882_v26, %v2450_v50  ;;  %v914_v40 = vmul.f32 %v912_v54, %v2450_v50  ;;  %v1034_v61 = vmul.f32 %v1032_v46, %v2450_v50  ;;  %s2600_s27 = sld [smem:[#allocation10 + $0x1e]] }
 0x163   : > { %v2377_v24 = vadd.f32 %v579_v19, %v571_v10  ;;  %v612_v19 = vstv %s2416_s8  ;;  %s2487_s8 = sld [smem:[#allocation10 + $0x3]] }
 0x166   : > { %v568_v25 = vpop.permute.xlu0 %567  ;;  %v684_v36 = vpop.permute.xlu2 %683 }
 0x167   : > { %v648_v28 = vpop.permute.xlu1 %647  ;;  %v572_v31 = vadd.f32 %v568_v25, %v558_v11  ;;  %v2472_v25 = vadd.f32 %v494_v4, %v2367_v58  ;;  %v978_v58 = vstv %s2430_s3  ;;  %s2530_s3 = sld [smem:[#allocation12]]  ;;  %v816_v4 = vmul.f32 %v2347_v1, %v814_v60 }
 0x168   : > { %v652_v32 = vadd.f32 %v648_v28, %v638_v52  ;;  %v1062_v52 = vstv %s2414_s14  ;;  %s2602_s14 = sld [smem:[#allocation10 + $0x1f]] }
 0x169   : > { %v2384_v37 = vadd.f32 %v580_v20, %v572_v31  ;;  %v854_v31 = vmul.f32 %v852_v16, %v2450_v50  ;;  %v918_v20 = vstv %s2426_s1  ;;  %s2516_s1 = sld [smem:[#allocation10 + $0x13]] }
 0x16a   : > { %v662_v34 = vadd.f32 %v660_v33, %v652_v32  ;;  %v858_v32 = vstv %s2420_s28  ;;  %v888_v33 = vstv %s2422_s15  ;;  %s2504_s28 = sld [smem:[#allocation10 + $0xb]] }
 0x16b   : > { %s2506_s15 = sld [smem:[#allocation10 + $0xf]] }
 0x16e   : > { %v646_v39 = vpop.permute.xlu0 %645  ;;  %v2396_v45 = vpop.permute.xlu2 %789 }
 0x16f   : > { %v764_v41 = vpop.permute.xlu1 %763  ;;  %v651_v15 = vadd.f32 %v646_v39, %v637_v18  ;;  %v942_v18 = vstv %s2405_s30  ;;  %v1068_v39 = vstv %s2445_s4  ;;  %s2592_s30 = sld [smem:[#allocation10 + $0x1b]] }
 0x170   : > { %v769_v21 = vadd.f32 %v764_v41, %v755_v38  ;;  %v944_v38 = vmul.f32 %v942_v18, %v2450_v50  ;;  %s2629_s4 = sld [smem:[#allocation12 + $0x7]] }
 0x171   : > { %v661_v7 = vadd.f32 %v659_v43, %v651_v15 }
 0x172   : > { %v779_v22 = vadd.f32 %v777_v44, %v769_v21 }
 0x176   : > { %v752_v12 = vpop.permute.xlu0 %751  ;;  %v802_v57 = vpop.permute.xlu2 %801 }
 0x177   : > { %v672_v13 = vpop.permute.xlu1 %671  ;;  %v756_v48 = vadd.f32 %v752_v12, %v740_v0 }
 0x178   : > { %v676_v51 = vadd.f32 %v672_v13, %v662_v34  ;;  %v1008_v34 = vstv %s2436_s0  ;;  %s2606_s0 = sld [smem:[#allocation12 + $0x6]] }
 0x179   : > { %v770_v53 = vadd.f32 %v766_v47, %v756_v48  ;;  %v972_v47 = vstv %s2407_s6  ;;  %s2476_s6 = sld [smem:[#allocation9 + $0x3]] }
 0x17b   : > { %v2418_v6 = vadd.f32 %v778_v56, %v770_v53 }
 0x17d   : > { %v794_v1 = vadd.f32 %v2396_v45, %v2418_v6  ;;  %v1003_v6 = vmul.f32 %v1002_v42, %v2472_v25 }
 0x17e   : > { %v670_v49 = vpop.permute.xlu0 %669  ;;  %v606_v10 = vpop.permute.xlu2 %605 }
 0x17f   : > { %v788_v27 = vpop.permute.xlu1 %787  ;;  %v675_v23 = vadd.f32 %v670_v49, %v661_v7 }
 0x180   : > { %v793_v62 = vadd.f32 %v788_v27, %v779_v22  ;;  %v974_v22 = vmul.f32 %v972_v47, %v2450_v50 }
 0x181   : > { %v689_v35 = vadd.f32 %v684_v36, %v675_v23 }
 0x182   : > { %v807_v2 = vadd.f32 %v802_v57, %v793_v62  ;;  %v1004_v57 = vmul.f32 %v1002_v42, %v2450_v50 }
 0x183   : > { %v2441_v5 = vadd.f32 %v697_v3, %v689_v35  ;;  %v1064_v3 = vmul.f32 %v1062_v52, %v2450_v50  ;;  %v883_v50 = vmul.f32 %v882_v26, %v2472_v25 }
 0x184   : > { %v2443_v8 = vadd.f32 %v815_v63, %v807_v2 }
 0x186   : > { %v686_v9 = vpop.permute.xlu0 %685 }
 0x187   : > { %v592_v11 = vpop.permute.xlu1 %591  ;;  %v690_v17 = vadd.f32 %v686_v9, %v676_v51  ;;  %v973_v51 = vmul.f32 %v972_v47, %v2472_v25  ;;  %v1033_v9 = vmul.f32 %v1032_v46, %v2472_v25  ;;  %v943_v47 = vmul.f32 %v942_v18, %v2472_v25 }
 0x188   : > { %v596_v55 = vadd.f32 %v592_v11, %v2384_v37  ;;  %v1038_v37 = vstv %s2439_s26  ;;  %s2534_s26 = sld [smem:[#allocation12 + $0x1]]  ;;  %v1063_v18 = vmul.f32 %v1062_v52, %v2472_v25 }
 0x189   : > { %v2474_v30 = vadd.f32 %v698_v14, %v690_v17  ;;  %v853_v14 = vmul.f32 %v852_v16, %v2472_v25  ;;  %v913_v17 = vmul.f32 %v912_v54, %v2472_v25 }
 0x18a   : > { %v610_v28 = vadd.f32 %v606_v10, %v596_v55 }
 0x18c   : > { %v614_v36 = vadd.f32 %v612_v19, %v610_v28 }
 0x18e   : > { %v860_v41 = vmul.f32 %v858_v32, %v614_v36  ;;  %v890_v15 = vmul.f32 %v888_v33, %v614_v36  ;;  %v920_v21 = vmul.f32 %v918_v20, %v614_v36  ;;  %v950_v43 = vmul.f32 %v948_v29, %v614_v36  ;;  %v590_v44 = vpop.permute.xlu0 %589 }
 0x18f   : > { %v604_v7 = vpop.permute.xlu1 %603  ;;  %v980_v0 = vmul.f32 %v978_v58, %v614_v36  ;;  %v1010_v12 = vmul.f32 %v1008_v34, %v614_v36  ;;  %v1040_v13 = vmul.f32 %v1038_v37, %v614_v36  ;;  %v595_v48 = vadd.f32 %v590_v44, %v2377_v24 }
 0x190   : > { %v2512_v53 = vadd.f32 %v860_v41, %v854_v31  ;;  %v2514_v56 = vadd.f32 %v890_v15, %v884_v59  ;;  %v2521_v49 = vadd.f32 %v920_v21, %v914_v40  ;;  %v2523_v27 = vadd.f32 %v950_v43, %v944_v38 }
 0x191   : > { %v1070_v24 = vmul.f32 %v1068_v39, %v614_v36  ;;  %v609_v23 = vadd.f32 %v604_v7, %v595_v48  ;;  %v2532_v62 = vadd.f32 %v980_v0, %v974_v22  ;;  %v2536_v35 = vadd.f32 %v1010_v12, %v1004_v57 }
 0x192   : > { %v2538_v2 = vadd.f32 %v1040_v13, %v1034_v61  ;;  %v730_v59 = vstv %s2447_s9  ;;  %v848_v40 = vstv %s2476_s6  ;;  %v894_v38 = vstv %s2457_s13  ;;  %s2017_s9 = smov 96   ;;  %s1590_s13 = sshll.u32 %s2159_s10, 4 }
 0x193   : > { %v613_v63 = vadd.f32 %v612_v19, %v609_v23  ;;  %v2552_v11 = vadd.f32 %v1070_v24, %v1064_v3  ;;  %v954_v41 = vstv %s2466_s20  ;;  %v870_v43 = vstv %s2487_s8  ;;  %s2013_s20 = smov 48   ;;  %s1695_s6 = sshll.u32 %s1990_s21, 4 }
 0x194   : > { %v984_v44 = vstv %s2485_s12  ;;  %v1014_v7 = vstv %s2525_s2  ;;  %v1044_v22 = vstv %s2570_s17  ;;  %v876_v12 = vstv %s2530_s3  ;;  %s1396_s2 = scalar_lea.sflag [#allocation5], %s2159_s10 }
 0x195   : > { %v979_v60 = vmul.f32 %v978_v58, %v613_v63  ;;  %v1039_v55 = vmul.f32 %v1038_v37, %v613_v63  ;;  %v859_v26 = vmul.f32 %v858_v32, %v613_v63  ;;  %v889_v19 = vmul.f32 %v888_v33, %v613_v63 }
 0x196   : > { %v804_v10 = vpop.permute.xlu0 %803  ;;  %v919_v46 = vmul.f32 %v918_v20, %v613_v63  ;;  %v949_v54 = vmul.f32 %v948_v29, %v613_v63  ;;  %v722_v29 = vpop.permute.xlu2 %721  ;;  %v1009_v25 = vmul.f32 %v1008_v34, %v613_v63  ;;  %v1069_v36 = vmul.f32 %v1068_v39, %v613_v63 }
 0x197   : > { %v710_v16 = vpop.permute.xlu1 %709  ;;  %v808_v28 = vadd.f32 %v804_v10, %v794_v1  ;;  %v2574_v45 = vadd.f32 %v979_v60, %v973_v51  ;;  %v2584_v31 = vadd.f32 %v1039_v55, %v1033_v9  ;;  %v2586_v32 = vadd.f32 %v859_v26, %v853_v14 }
 0x198   : > { %v2588_v33 = vadd.f32 %v889_v19, %v883_v50  ;;  %v2590_v20 = vadd.f32 %v919_v46, %v913_v17  ;;  %v2594_v52 = vadd.f32 %v949_v54, %v943_v47  ;;  %v1011_v58 = vadd.f32 %v1009_v25, %v1003_v6 }
 0x199   : > { %v818_v42 = vadd.f32 %v816_v4, %v808_v28  ;;  %v1071_v37 = vadd.f32 %v1069_v36, %v1063_v18  ;;  %v864_v34 = vstv %s2452_s22  ;;  %v924_v39 = vstv %s2461_s16  ;;  %s2014_s22 = smov 32   ;;  %s2018_s16 = smov 112  }
 0x19a   : > { %v900_v13 = vstv %s2495_s19  ;;  %v930_v48 = vstv %s2504_s28  ;;  %v906_v57 = vstv %s2534_s26  ;;  %v960_v61 = vstv %s2506_s15  ;;  %s2012_s19 = smov 16   ;;  %s1409_s28 = scalar_lea.hbm %s3052_s5, %s1695_s6 }
 0x19b   : > { %v990_v24 = vstv %s2516_s1  ;;  %v1020_v23 = vstv %s2572_s24  ;;  %v936_v63 = vstv %s2546_s23  ;;  %v966_v4 = vstv %s2550_s29  ;;  %s2015_s23 = smov 64   ;;  %s2016_s29 = smov 80  }
 0x19c   : > { %v996_v51 = vstv %s2565_s7  ;;  %v1050_v9 = vstv %s2592_s30  ;;  %v1074_v14 = vstv %s2600_s27  ;;  %v714_v50 = vadd.f32 %v710_v16, %v2474_v30  ;;  %s310_s15 = scalar_lea.vmem [#allocation13], %s1590_s13  ;;  %s1413_s1 = sshll.u32 %s1409_s28, 4  ;;  %s1414_s1 = int_to_ptr.hbm [resolvable:$true] %s1413_s1 }
 0x19d   : > { %v1026_v1 = vstv %s2582_s25  ;;  %v1080_v60 = vstv %s2602_s14  ;;  %v1056_v47 = vstv %s2606_s0  ;;  %v2010_v10 = vmov 1983009808   ;;  %s1411_s21 = sshll.u32 %s310_s15, 4  ;;  %s1918_s3 = sshra.s32 %s1414_s1, 4  ;;  %s1412_s21 = int_to_ptr.vmem [resolvable:$true] %s1411_s21  ;;  %s1919_s3 = int_to_ptr.hbm [resolvable:$true] %s1918_s3 }
 0x19e   : > { %v708_v15 = vpop.permute.xlu0 %707  ;;  %v1097_v26 = vunpack.c.l.s4 %v2010_v10  ;;  %v2011_v19 = vmov 1934713408   ;;  %s1920_s26 = scalar_lea.hbm %s1919_s3, 16  ;;  %s1924_s24 = scalar_lea.hbm %s3052_s5, 32 }
 0x19f   : > { %v826_v21 = vpop.permute.xlu1 %825  ;;  %v713_v0 = vadd.f32 %v708_v15, %v2441_v5  ;;  %v828_v5 = vpop.permute.xlu2 %827  ;;  %v1145_v46 = vunpack.c.l.s4 %v2011_v19  ;;  %p1921_p1 = scmp.ne.s32.totalorder %s1919_s3, %s1920_s26  ;;  %p1925_p11 = scmp.lt.s32.totalorder %s1919_s3, %s3052_s5 }
 0x1a0   : > { %v832_v55 = vadd.f32 %v828_v5, %v818_v42  ;;  %p1926_p12 = scmp.lt.s32.totalorder %s1924_s24, %s1920_s26 }
 0x1a1   : > { %v727_v3 = vadd.f32 %v722_v29, %v713_v0  ;;  %p1922_p4 = pnand %p1921_p1, %p2138_p7 }
 0x1a2   : > { %p1927_p13 = por %p1926_p12, %p1925_p11 }
 0x1a3   : > { %v731_v17 = vadd.f32 %v730_v59, %v727_v3  ;;  %p1923_p8 = pneg %p1922_p4 }
 0x1a5   : > { %v985_v54 = vmul.f32 %v984_v44, %v731_v17  ;;  %v1045_v28 = vmul.f32 %v1044_v22, %v731_v17  ;;  %v865_v6 = vmul.f32 %v864_v34, %v731_v17  ;;  %v895_v30 = vmul.f32 %v894_v38, %v731_v17  ;;  %p1928_p0 = pnand %p1927_p13, %p1923_p8 }
 0x1a6   : > { %v724_v16 = vpop.permute.xlu0 %723  ;;  %v925_v29 = vmul.f32 %v924_v39, %v731_v17  ;;  %v955_v25 = vmul.f32 %v954_v41, %v731_v17  ;;  %v1015_v42 = vmul.f32 %v1014_v7, %v731_v17  ;;  %v1075_v36 = vmul.f32 %v1074_v14, %v731_v17 }
 0x1a7   : > { %v842_v18 = vpop.permute.xlu1 %841  ;;  %v728_v15 = vadd.f32 %v724_v16, %v714_v50  ;;  %v2650_v3 = vadd.f32 %v985_v54, %v2574_v45  ;;  %v2653_v5 = vadd.f32 %v1045_v28, %v2584_v31  ;;  %v2656_v10 = vadd.f32 %v865_v6, %v2586_v32 }
 0x1a8   : > { %v846_v0 = vadd.f32 %v842_v18, %v832_v55  ;;  %v2659_v19 = vadd.f32 %v895_v30, %v2588_v33  ;;  %v2662_v50 = vadd.f32 %v925_v29, %v2590_v20  ;;  %v2665_v45 = vadd.f32 %v955_v25, %v2594_v52 }
 0x1a9   : > { %v732_v17 = vadd.f32 %v730_v59, %v728_v15  ;;  %v2669_v55 = vadd.f32 %v1015_v42, %v1011_v58  ;;  %v2671_v32 = vadd.f32 %v1075_v36, %v1071_v37  ;;  %v831_v33 = vadd.f32 %v826_v21, %v2443_v8 }
 0x1aa   : > { %v850_v31 = vadd.f32 %v848_v40, %v846_v0  ;;  %v1086_v54 = vstv %s2629_s4  ;;  %v2675_v28 = vunpack.c.0.s8 %v1097_v26  ;;  %v2677_v20 = vunpack.c.0.s8 %v1145_v46 }
 0x1ab   : > { %v866_v6 = vmul.f32 %v864_v34, %v732_v17  ;;  %v896_v59 = vmul.f32 %v894_v38, %v732_v17  ;;  %v926_v37 = vmul.f32 %v924_v39, %v732_v17  ;;  %v956_v8 = vmul.f32 %v954_v41, %v732_v17 }
 0x1ac   : > { %v872_v52 = vmul.f32 %v870_v43, %v850_v31  ;;  %v902_v58 = vmul.f32 %v900_v13, %v850_v31  ;;  %v932_v30 = vmul.f32 %v930_v48, %v850_v31  ;;  %v962_v21 = vmul.f32 %v960_v61, %v850_v31 }
 0x1ad   : > { %v868_v26 = vadd.f32 %v866_v6, %v2512_v53  ;;  %v898_v34 = vadd.f32 %v896_v59, %v2514_v56  ;;  %v986_v46 = vmul.f32 %v984_v44, %v732_v17  ;;  %v992_v38 = vmul.f32 %v990_v24, %v850_v31 }
 0x1ae   : > { %v840_v39 = vpop.permute.xlu0 %839  ;;  %v928_v16 = vadd.f32 %v926_v37, %v2521_v49  ;;  %v958_v41 = vadd.f32 %v956_v8, %v2523_v27  ;;  %v1016_v53 = vmul.f32 %v1014_v7, %v732_v17  ;;  %v1022_v56 = vmul.f32 %v1020_v23, %v850_v31 }
 0x1af   : > { %v845_v18 = vadd.f32 %v840_v39, %v831_v33  ;;  %v874_v29 = vadd.f32 %v872_v52, %v868_v26  ;;  %v904_v44 = vadd.f32 %v902_v58, %v898_v34  ;;  %v988_v25 = vadd.f32 %v986_v46, %v2532_v62 }
 0x1b0   : > { %v934_v42 = vadd.f32 %v932_v30, %v928_v16  ;;  %v964_v36 = vadd.f32 %v962_v21, %v958_v41  ;;  %v1018_v15 = vadd.f32 %v1016_v53, %v2536_v35  ;;  %v1046_v49 = vmul.f32 %v1044_v22, %v732_v17 }
 0x1b1   : > { %v2711_v27 = vadd.f32 %v848_v40, %v845_v18  ;;  %v2715_v7 = vadd.f32 %v876_v12, %v874_v29  ;;  %v2719_v0 = vadd.f32 %v906_v57, %v904_v44  ;;  %v994_v62 = vadd.f32 %v992_v38, %v988_v25 }
 0x1b2   : > { %v2723_v33 = vadd.f32 %v936_v63, %v934_v42  ;;  %v2727_v35 = vadd.f32 %v966_v4, %v964_v36  ;;  %v1024_v22 = vadd.f32 %v1022_v56, %v1018_v15  ;;  %v1048_v40 = vadd.f32 %v1046_v49, %v2538_v2 }
 0x1b3   : > { %v880_v6 = vmax.f32 %v2715_v7, 0.0  ;;  %v910_v52 = vmax.f32 %v2719_v0, 0.0  ;;  %v991_v59 = vmul.f32 %v990_v24, %v2711_v27  ;;  %v2737_v58 = vadd.f32 %v996_v51, %v994_v62 }
 0x1b4   : > { %v940_v37 = vmax.f32 %v2723_v33, 0.0  ;;  %v970_v30 = vmax.f32 %v2727_v35, 0.0  ;;  %v2743_v8 = vadd.f32 %v1026_v1, %v1024_v22  ;;  %v1051_v2 = vmul.f32 %v1050_v9, %v2711_v27 }
 0x1b5   : > { %v1000_v21 = vmax.f32 %v2737_v58, 0.0  ;;  %v1052_v24 = vmul.f32 %v1050_v9, %v850_v31  ;;  %v1076_v26 = vmul.f32 %v1074_v14, %v732_v17  ;;  %v1082_v34 = vmul.f32 %v1080_v60, %v850_v31 }
 0x1b6   : > { %v1030_v46 = vmax.f32 %v2743_v8, 0.0  ;;  %v1204_v38 = vrot.slane %v940_v37, 4  ;;  %v1216_v39 = vrot.slane %v970_v30, 4  ;;  %v993_v16 = vadd.f32 %v991_v59, %v2650_v3 }
 0x1b7   : > { %v1054_v41 = vadd.f32 %v1052_v24, %v1048_v40  ;;  %v1078_v53 = vadd.f32 %v1076_v26, %v2552_v11  ;;  %v1053_v9 = vadd.f32 %v1051_v2, %v2653_v5  ;;  %v871_v14 = vmul.f32 %v870_v43, %v2711_v27 }
 0x1b8   : > { %v1205_v17 = vsel %vm1092_vm3, %v1204_v38, %v880_v6  ;;  %v1217_v31 = vsel %vm1092_vm3, %v1216_v39, %v910_v52  ;;  %v2774_v3 = vadd.f32 %v996_v51, %v993_v16  ;;  %v901_v11 = vmul.f32 %v900_v13, %v2711_v27 }
 0x1b9   : > { %v2781_v43 = vadd.f32 %v1056_v47, %v1054_v41  ;;  %v1084_v5 = vadd.f32 %v1082_v34, %v1078_v53  ;;  %v1211_v56 = vperm.slane %v1205_v17, %v2675_v28  ;;  %v1223_v18 = vperm.slane %v1217_v31, %v2675_v28 }
 0x1ba   : > { %v999_v29 = vmax.f32 %v2774_v3, 0.0  ;;  %v2788_v44 = vadd.f32 %v1056_v47, %v1053_v9  ;;  %v873_v51 = vadd.f32 %v871_v14, %v2656_v10  ;;  %v903_v25 = vadd.f32 %v901_v11, %v2659_v19 }
 0x1bb   : > { %v1060_v13 = vmax.f32 %v2781_v43, 0.0  ;;  %v2795_v42 = vadd.f32 %v1086_v54, %v1084_v5  ;;  %v1252_v36 = vrot.slane %v1223_v18, 4  ;;  %v931_v15 = vmul.f32 %v930_v48, %v2711_v27 }
 0x1bc   : > { %v1059_v49 = vmax.f32 %v2788_v44, 0.0  ;;  %v2803_v47 = vadd.f32 %v876_v12, %v873_v51  ;;  %v907_v10 = vadd.f32 %v906_v57, %v903_v25  ;;  %v961_v19 = vmul.f32 %v960_v61, %v2711_v27 }
 0x1bd   : > { %v1090_v62 = vmax.f32 %v2795_v42, 0.0  ;;  %v1228_v22 = vrot.slane %v1060_v13, 4  ;;  %v1253_v48 = vsel %vm1092_vm3, %v1252_v36, %v1211_v56  ;;  %v933_v40 = vadd.f32 %v931_v15, %v2662_v50 }
 0x1be   : > { %v2816_v59 = vperm.slane %v1253_v48, %v2677_v20  ;;  %v879_v12 = vmax.f32 %v2803_v47, 0.0  ;;  %v909_v57 = vmax.f32 %v907_v10, 0.0  ;;  %v963_v2 = vadd.f32 %v961_v19, %v2665_v45 }
 0x1bf   : > { %v1229_v61 = vsel %vm1092_vm3, %v1228_v22, %v1000_v21  ;;  %v1240_v24 = vrot.slane %v1090_v62, 4  ;;  %v2827_v26 = vadd.f32 %v936_v63, %v933_v40  ;;  %v1021_v50 = vmul.f32 %v1020_v23, %v2711_v27 }
 0x1c0   : > { %v1235_v34 = vperm.slane %v1229_v61, %v2675_v28  ;;  %v1302_v38 = vrot.slane %v2816_v59, 4  ;;  %v2836_v45 = vadd.f32 %v966_v4, %v963_v2  ;;  %v1081_v39 = vmul.f32 %v1080_v60, %v2711_v27 }
 0x1c1   : > { %v1241_v16 = vsel %vm1092_vm3, %v1240_v24, %v1030_v46  ;;  %v939_v63 = vmax.f32 %v2827_v26, 0.0  ;;  %v1023_v41 = vadd.f32 %v1021_v50, %v2669_v55  ;;  %v2846_v23 = vrot.slane %v909_v57, 4 }
 0x1c2   : > { %v1247_v53 = vperm.slane %v1241_v16, %v2675_v28  ;;  %v969_v9 = vmax.f32 %v2836_v45, 0.0  ;;  %v1083_v4 = vadd.f32 %v1081_v39, %v2671_v32  ;;  %v1116_v14 = vrot.slane %v1059_v49, 4 }
 0x1c3   : > { %v2855_v60 = vadd.f32 %v1026_v1, %v1023_v41  ;;  %v1091_v27 = vrot.slane %v939_v63, 4  ;;  %v1254_v17 = vrot.slane %v1211_v56, 4  ;;  %v1278_v31 = vrot.slane %v1235_v34, 4 }
 0x1c4   : > { %v1276_v55 = vrot.slane %v1247_v53, 4  ;;  %v2861_v11 = vadd.f32 %v1086_v54, %v1083_v4  ;;  %v1104_v5 = vrot.slane %v969_v9, 4  ;;  %v1117_v32 = vsel %vm1092_vm3, %v1116_v14, %v999_v29 }
 0x1c5   : > { %v1029_v51 = vmax.f32 %v2855_v60, 0.0  ;;  %v1093_v1 = vsel %vm1092_vm3, %v1091_v27, %v879_v12  ;;  %v1123_v56 = vperm.slane %v1117_v32, %v2675_v28  ;;  %v1255_v25 = vsel %vm1092_vm3, %v1223_v18, %v1254_v17 }
 0x1c6   : > { %v1277_v54 = vsel %vm1092_vm3, %v1276_v55, %v1235_v34  ;;  %v1089_v36 = vmax.f32 %v2861_v11, 0.0  ;;  %v1099_v15 = vperm.slane %v1093_v1, %v2675_v28  ;;  %v1105_v10 = vsel %vm1092_vm3, %v1104_v5, %v909_v57 }
 0x1c7   : > { %v2879_v19 = vperm.slane %v1277_v54, %v2677_v20  ;;  %v1111_v22 = vperm.slane %v1105_v10, %v2675_v28  ;;  %v1166_v48 = vrot.slane %v1123_v56, 4  ;;  %v1263_v40 = vperm.slane %v1255_v25, %v2677_v20 }
 0x1c8   : > { %v1128_v2 = vrot.slane %v1089_v36, 4  ;;  %v1142_v18 = vrot.slane %v1099_v15, 4  ;;  %v1279_v61 = vsel %vm1092_vm3, %v1247_v53, %v1278_v31  ;;  %v1206_v24 = vrot.slane %v880_v6, 4 }
 0x1c9   : > { %v1300_v50 = vrot.slane %v2879_v19, 4  ;;  %v1303_v57 = vsel %vm1092_vm3, %v2879_v19, %v1302_v38  ;;  %v1140_v34 = vrot.slane %v1111_v22, 4  ;;  %v1287_v39 = vperm.slane %v1279_v61, %v2677_v20 }
 0x1ca   : > { %1345 = vrot.lane.b32.xlu0 %v1303_v57, %s2012_s19  ;;  %v1129_v16 = vsel %vm1092_vm3, %v1128_v2, %v1029_v51  ;;  %v1143_v41 = vsel %vm1092_vm3, %v1111_v22, %v1142_v18  ;;  %v1306_v53 = vrot.slane %v1263_v40, 4  ;;  %v1207_v7 = vsel %vm1092_vm3, %v940_v37, %v1206_v24 }
 0x1cb   : > { %v1135_v6 = vperm.slane %v1129_v16, %v2675_v28  ;;  %v1151_v38 = vperm.slane %v1143_v41, %v2677_v20  ;;  %v1141_v4 = vsel %vm1092_vm3, %v1140_v34, %v1099_v15  ;;  %v1304_v14 = vrot.slane %v1287_v39, 4 }
 0x1cc   : > { %v2904_v27 = vperm.slane %v1141_v4, %v2677_v20  ;;  %v2907_v17 = vsel %vm1092_vm3, %v1287_v39, %v1306_v53  ;;  %v1215_v31 = vperm.slane %v1207_v7, %v2675_v28  ;;  %v1218_v33 = vrot.slane %v910_v52, 4 }
 0x1cd   : > { %v1167_v37 = vsel %vm1092_vm3, %v1135_v6, %v1166_v48  ;;  %v1164_v55 = vrot.slane %v1135_v6, 4  ;;  %v1194_v5 = vrot.slane %v1151_v38, 4  ;;  %v1305_v32 = vsel %vm1092_vm3, %v1304_v14, %v1263_v40 }
 0x1ce   : > { %v1175_v1 = vperm.slane %v1167_v37, %v2677_v20  ;;  %v1190_v25 = vrot.slane %v2904_v27, 4  ;;  %v1219_v54 = vsel %vm1092_vm3, %v970_v30, %v1218_v33  ;;  %v1230_v15 = vrot.slane %v1000_v21, 4 }
 0x1cf   : > { %v1165_v0 = vsel %vm1092_vm3, %v1164_v55, %v1123_v56  ;;  %v1227_v52 = vperm.slane %v1219_v54, %v2675_v28  ;;  %v1242_v10 = vrot.slane %v1030_v46, 4  ;;  %v1094_v22 = vrot.slane %v879_v12, 4 }
 0x1d0   : > { %v1192_v48 = vrot.slane %v1175_v1, 4  ;;  %v2928_v40 = vperm.slane %v1165_v0, %v2677_v20  ;;  %v1195_v35 = vsel %vm1092_vm3, %v1175_v1, %v1194_v5  ;;  %v1231_v58 = vsel %vm1092_vm3, %v1060_v13, %v1230_v15 }
 0x1d1   : > { %v1239_v30 = vperm.slane %v1231_v58, %v2675_v28  ;;  %v1243_v8 = vsel %vm1092_vm3, %v1090_v62, %v1242_v10  ;;  %v1264_v21 = vrot.slane %v1227_v52, 4  ;;  %v1095_v46 = vsel %vm1092_vm3, %v939_v63, %v1094_v22 }
 0x1d2   : > { %v1193_v47 = vsel %vm1092_vm3, %v1192_v48, %v1151_v38  ;;  %v1188_v12 = vrot.slane %v2928_v40, 4  ;;  %v1191_v43 = vsel %vm1092_vm3, %v2928_v40, %v1190_v25  ;;  %1325 = vrot.lane.b32.xlu0 %v1195_v35, %s2013_s20  ;;  %v1251_v13 = vperm.slane %v1243_v8, %v2675_v28 }
 0x1d3   : > { %1321 = vrot.lane.b32.xlu1 %v1193_v47, %s2014_s22  ;;  %1317 = vrot.lane.b32.xlu2 %v1191_v43, %s2012_s19  ;;  %v1265_v42 = vsel %vm1092_vm3, %v1264_v21, %v1215_v31  ;;  %v1103_v62 = vperm.slane %v1095_v46, %v2675_v28  ;;  %v1107_v26 = vsel %vm1092_vm3, %v969_v9, %v2846_v23  ;;  %v1118_v63 = vrot.slane %v999_v29, 4 }
 0x1d4   : > { %v1271_v56 = vperm.slane %v1265_v42, %v2677_v20  ;;  %v1288_v2 = vrot.slane %v1251_v13, 4  ;;  %v1115_v18 = vperm.slane %v1107_v26, %v2675_v28  ;;  %v1130_v61 = vrot.slane %v1029_v51, 4 }
 0x1d5   : > { %v1119_v24 = vsel %vm1092_vm3, %v1059_v49, %v1118_v63  ;;  %v1154_v57 = vrot.slane %v1103_v62, 4  ;;  %v1266_v34 = vrot.slane %v1215_v31, 4  ;;  %v1290_v45 = vrot.slane %v1239_v30, 4 }
 0x1d6   : > { %v1289_v23 = vsel %vm1092_vm3, %v1288_v2, %v1239_v30  ;;  %v1127_v3 = vperm.slane %v1119_v24, %v2675_v28  ;;  %v1131_v29 = vsel %vm1092_vm3, %v1089_v36, %v1130_v61  ;;  %v1152_v9 = vrot.slane %v1115_v18, 4 }
 0x1d7   : > { %v1295_v39 = vperm.slane %v1289_v23, %v2677_v20  ;;  %v1139_v60 = vperm.slane %v1131_v29, %v2675_v28  ;;  %v1155_v44 = vsel %vm1092_vm3, %v1115_v18, %v1154_v57  ;;  %v1267_v49 = vsel %vm1092_vm3, %v1227_v52, %v1266_v34 }
 0x1d8   : > { %v1153_v51 = vsel %vm1092_vm3, %v1152_v9, %v1103_v62  ;;  %v1163_v16 = vperm.slane %v1155_v44, %v2677_v20  ;;  %v1178_v41 = vrot.slane %v1127_v3, 4  ;;  %v1275_v53 = vperm.slane %v1267_v49, %v2677_v20 }
 0x1d9   : > { %v1308_v7 = vrot.slane %v1295_v39, 4  ;;  %v1159_v11 = vperm.slane %v1153_v51, %v2677_v20  ;;  %v1176_v36 = vrot.slane %v1139_v60, 4  ;;  %v1291_v6 = vsel %vm1092_vm3, %v1251_v13, %v1290_v45 }
 0x1da   : > { %v1179_v38 = vsel %vm1092_vm3, %v1139_v60, %v1178_v41  ;;  %v1299_v28 = vperm.slane %v1291_v6, %v2677_v20  ;;  %v1310_v4 = vrot.slane %v1271_v56, 4  ;;  %v1314_v14 = vrot.slane %v1275_v53, 4 }
 0x1db   : > { %1353 = vrot.lane.b32.xlu1 %v2907_v17, %s2013_s20  ;;  %1349 = vrot.lane.b32.xlu2 %v1305_v32, %s2014_s22  ;;  %v1309_v31 = vsel %vm1092_vm3, %v1308_v7, %v1271_v56  ;;  %v1177_v33 = vsel %vm1092_vm3, %v1176_v36, %v1127_v3  ;;  %v1198_v37 = vrot.slane %v1159_v11, 4  ;;  %v1187_v55 = vperm.slane %v1179_v38, %v2677_v20 }
 0x1dc   : > { %1357 = vrot.lane.b32.xlu0 %v1309_v31, %s2015_s23  ;;  %v1183_v5 = vperm.slane %v1177_v33, %v2677_v20  ;;  %v1312_v1 = vrot.slane %v1299_v28, 4  ;;  %v1311_v25 = vsel %vm1092_vm3, %v1295_v39, %v1310_v4  ;;  %v1315_v54 = vsel %vm1092_vm3, %v1299_v28, %v1314_v14 }
 0x1dd   : > { %v1200_v15 = vrot.slane %v1187_v55, 4  ;;  %v1202_v17 = vrot.slane %v1163_v16, 4  ;;  %v1189_v32 = vsel %vm1092_vm3, %v1188_v12, %v2904_v27  ;;  %v1301_v20 = vsel %vm1092_vm3, %v1300_v50, %v2816_v59 }
 0x1de   : > { %v1199_v0 = vsel %vm1092_vm3, %v1183_v5, %v1198_v37  ;;  %v1196_v52 = vrot.slane %v1183_v5, 4  ;;  %v1313_v10 = vsel %vm1092_vm3, %v1312_v1, %v1275_v53 }
 0x1df   : > { %v1201_v22 = vsel %vm1092_vm3, %v1200_v15, %v1163_v16  ;;  %v1203_v48 = vsel %vm1092_vm3, %v1187_v55, %v1202_v17 }
 0x1e0   : > { %v1197_v40 = vsel %vm1092_vm3, %v1196_v52, %v1159_v11 }
 0x1e3   : > { %1333 = vrot.lane.b32.xlu1 %v1199_v0, %s2016_s29  ;;  %1329 = vrot.lane.b32.xlu2 %v1197_v40, %s2015_s23 }
 0x1e4   : > { %1337 = vrot.lane.b32.xlu0 %v1201_v22, %s2017_s9 }
 0x1eb   : > { %1365 = vrot.lane.b32.xlu1 %v1313_v10, %s2017_s9  ;;  %1361 = vrot.lane.b32.xlu2 %v1311_v25, %s2016_s29 }
 0x1ec   : > { %1369 = vrot.lane.b32.xlu0 %v1315_v54, %s2018_s16 }
 0x1f3   : > { %1341 = vrot.lane.b32.xlu2 %v1203_v48, %s2018_s16 }
 0x22d   : > { %v1318_v27 = vpop.permute.xlu2 %1317 }
 0x22e   : > { %v1373_v21 = vsel %vm1372_vm4, %v1189_v32, %v1318_v27 }
 0x235   : > { %v1350_v19 = vpop.permute.xlu2 %1349 }
 0x23c   : > { %v1346_v59 = vpop.permute.xlu0 %1345 }
 0x23d   : > { %v1330_v50 = vpop.permute.xlu2 %1329  ;;  %v1386_v43 = vsel %vm1372_vm4, %v1301_v20, %v1346_v59 }
 0x23e   : > { %v1387_v62 = vsel %vm1374_vm5, %v1386_v43, %v1350_v19 }
 0x244   : > { %v1326_v35 = vpop.permute.xlu0 %1325 }
 0x245   : > { %v1322_v58 = vpop.permute.xlu1 %1321  ;;  %v1362_v30 = vpop.permute.xlu2 %1361 }
 0x246   : > { %v1375_v47 = vsel %vm1374_vm5, %v1373_v21, %v1322_v58 }
 0x247   : > { %v1377_v12 = vsel %vm1376_vm6, %v1375_v47, %v1326_v35 }
 0x248   : > { %v1379_v42 = vsel %vm1378_vm7, %v1377_v12, %v1330_v50 }
 0x24d   : > { %v1354_v8 = vpop.permute.xlu1 %1353  ;;  %v1342_v2 = vpop.permute.xlu2 %1341 }
 0x24e   : > { %v1358_v46 = vpop.permute.xlu0 %1357  ;;  %v1388_v56 = vsel %vm1376_vm6, %v1387_v62, %v1354_v8 }
 0x24f   : > { %v1389_v24 = vsel %vm1378_vm7, %v1388_v56, %v1358_v46 }
 0x250   : > { %v1390_v34 = vsel %vm1380_vm9, %v1389_v24, %v1362_v30 }
 0x255   : > { %v1334_v13 = vpop.permute.xlu1 %1333 }
 0x256   : > { %v1381_v26 = vsel %vm1380_vm9, %v1379_v42, %v1334_v13  ;;  %v1338_v63 = vpop.permute.xlu0 %1337 }
 0x257   : > { %v1383_v18 = vsel %vm1382_vm8, %v1381_v26, %v1338_v63 }
 0x258   : > { %v1385_v61 = vsel %vm1384_vm10, %v1383_v18, %v1342_v2 }
 0x259   : > { %1393 = vst [vmem:[%s310_s15] sm:$0xff] %v1385_v61 }
 0x25d   : > { %v1366_v57 = vpop.permute.xlu1 %1365 }
 0x25e   : > { %v1391_v45 = vsel %vm1382_vm8, %v1390_v34, %v1366_v57  ;;  %v1370_v23 = vpop.permute.xlu0 %1369 }
 0x25f   : > { %v1392_v3 = vsel %vm1384_vm10, %v1391_v45, %v1370_v23 }
 0x260   : > { %1394 = vst [vmem:[%s310_s15 + $0x8] sm:$0xff] %v1392_v3 }
 0x261   : > { %1931 = shalt.err (!%p1928_p0)
}
 0x262   : > { %1714 = dma.vmem_to_hbm [thread:$0]  (%p2138_p7), %s1412_s21, 256, %s1414_s1, %s1396_s2  }
 0x263 PF: > { %s3085_s27 = sld [smem:[#allocation22_spill]]  ;;  %s1425_s14 = sand.u32 1, %s1978_s18  }
 0x264   : > { %p1734_p3 = pnand %p1580_p9, %p2098_p6  ;;  %s1426_s0 = scalar_lea.sflag [#allocation5], %s1425_s14 }
 0x266   : > { %p1735_p5 = pneg %p1734_p3 }
 0x268   : > { %1973 = dma.done.wait (%p1735_p5), %s1426_s0, 256  }
 0x269   : > { %1975 = vsyncadd (%p1735_p5), %s1426_s0, 4294967040  ;;  %s24_s23 = sadd.s32 1, %s3085_s27   ;;  %s3086_s18 = sld [smem:[#allocation19_spill]] }
 0x26a   : > { %p21_p10 = scmp.ge.s32.totalorder %s24_s23, 4   ;;  %s3087_s19 = sld [smem:[#allocation20_spill]] }
 0x26b   : > { %s3088_s20 = sld [smem:[#allocation25_spill]] }
 0x26c   : > { %s3089_s21 = sld [smem:[#allocation21_spill]]  ;;  %23 = sbr.rel (!%p21_p10) target bundleno = 15 (0xf), region = 119 }
 0x26d   : > { %s3090_s22 = sld [smem:[#allocation24_spill]] }
 0x271   :  { %1432 = vsyncpa [#allocation4], 1 }
 0x272   :  { %1434 = vsyncpa [#allocation4 + $0x1], 1 }
 0x273   :  { %1435 = vsyncpa [#allocation5], 1 }
 0x274   :  { %1437 = vsyncpa [#allocation5 + $0x1], 1 }
 0x275   :  { %1438 = vsyncpa [#allocation6], 1 }
 0x276   :  { %1440 = vsyncpa [#allocation6 + $0x1], 1 }
 0x277   :  { %1441 = vsyncpa [#allocation7], 1 }
 0x278   :  { %1443 = vsyncpa [#allocation7 + $0x1], 1 }
 0x279   :  { %1444 = vsyncpa [#allocation11], 1 }

</bundles_post_ra>
